<compile_context>
chip_gen: v6e
topology: v6e:2x2x1
jax: 0.10.0
libtpu: 0.0.40
codegen_flags: <defaults>
</compile_context>

<pallas_src>
import functools

import jax
import jax.numpy as jnp
from jax.experimental import pallas as pl
from jax.experimental.pallas import tpu as pltpu


def _round_up(n, m):
    return ((n + m - 1) // m) * m


def _sigmoid(x):
    # tanh form: single EUP op + cheap VPU ops, no VALU divide, no exp overflow.
    return 0.5 * (jnp.tanh(0.5 * x) + 1.0)


def _gru_kernel(len_ref, x_ref, wih_ref, whh_ref, bih_ref, bhh_ref, *rest,
                t_blk, h_pad, has_h0, emit_all):
    """One (batch_block, time_block) grid point: t_blk fused GRU steps."""
    pos = 0
    h0_ref = None
    if has_h0:
        h0_ref = rest[pos]
        pos += 1
    y_ref = None
    if emit_all:
        y_ref = rest[pos]
        pos += 1
    hlast_ref = rest[pos]
    h_scr = rest[pos + 1]

    tb = pl.program_id(1)

    @pl.when(tb == 0)
    def _init():
        if has_h0:
            h_scr[...] = h0_ref[...].astype(jnp.float32)
        else:
            h_scr[...] = jnp.zeros_like(h_scr)

    lengths = len_ref[...]                           # (bm, 1) int32
    wih = wih_ref[...]                               # (E,  3*Hp) mxu dtype
    whh = whh_ref[...]                               # (Hp, 3*Hp) mxu dtype
    bih = bih_ref[...].astype(jnp.float32)           # (1, 3*Hp) f32
    bhh = bhh_ref[...].astype(jnp.float32)

    Hp = h_pad
    h = h_scr[...]                                   # (bm, Hp) f32 carried state
    t0 = tb * t_blk

    # statically unrolled timestep loop — the scheduler sees all t_blk steps.
    for j in range(t_blk):
        x_t = x_ref[:, j, :]                         # (bm, E) mxu dtype
        gi = jnp.dot(x_t, wih, preferred_element_type=jnp.float32) + bih
        gh = jnp.dot(h.astype(whh.dtype), whh,
                     preferred_element_type=jnp.float32) + bhh
        # PyTorch gate order: r, z, n — lane-aligned slices (Hp % 128 == 0).
        r = _sigmoid(gi[:, 0:Hp] + gh[:, 0:Hp])
        z = _sigmoid(gi[:, Hp:2 * Hp] + gh[:, Hp:2 * Hp])
        n = jnp.tanh(gi[:, 2 * Hp:3 * Hp] + r * gh[:, 2 * Hp:3 * Hp])
        h_cand = (1.0 - z) * n + z * h
        # packed-sequence masking; where() is NaN-safe for OOB edge-block rows.
        valid = (t0 + j) < lengths                   # (bm, 1) bool
        h = jnp.where(valid, h_cand, h)
        if emit_all:
            y_ref[:, j, :] = h.astype(y_ref.dtype)

    h_scr[...] = h

    @pl.when(tb == pl.num_programs(1) - 1)
    def _finalize():
        hlast_ref[...] = h.astype(hlast_ref.dtype)


def gru_encoder(x, x_mask, params, init_hidden=None, return_all_hidden=False,
                block_b=128, block_t=8, mxu_dtype=jnp.bfloat16):
    """x: (B, F, E), x_mask: (B, F).  Returns (B, H) or (B, F, H)."""
    B, F, E = x.shape
    H = params["w_hh"].shape[0]
    assert params["w_ih"].shape == (E, 3 * H)
    assert params["w_hh"].shape == (H, 3 * H)

    Hp = _round_up(H, 128)   # lane-align each gate (dense slices & stores)

    # pack_padded_sequence semantics: per-row prefix length, clamped to >= 1.
    lengths = jnp.maximum(jnp.sum(x_mask.astype(jnp.int32), axis=-1), 1)
    lengths = lengths.reshape(B, 1)

    # Gate-padded weights: (rows, 3H) -> (rows, 3, H) -> pad H -> (rows, 3*Hp).
    # Zero padding keeps padded hidden columns exactly 0 through the recurrence.
    def pad_gate_cols(w):
        rows = w.shape[0]
        w3 = w.reshape(rows, 3, H)
        w3 = jnp.pad(w3, ((0, 0), (0, 0), (0, Hp - H)))
        return w3.reshape(rows, 3 * Hp)

    w_ih = pad_gate_cols(params["w_ih"]).astype(mxu_dtype)               # (E, 3Hp)
    w_hh = jnp.pad(pad_gate_cols(params["w_hh"]),
                   ((0, Hp - H), (0, 0))).astype(mxu_dtype)              # (Hp, 3Hp)
    b_ih = pad_gate_cols(params["b_ih"].reshape(1, 3 * H)).astype(jnp.float32)
    b_hh = pad_gate_cols(params["b_hh"].reshape(1, 3 * H)).astype(jnp.float32)

    x_mx = x.astype(mxu_dtype)                       # bf16 feed for the MXU / DMA

    has_h0 = init_hidden is not None
    args = [lengths, x_mx, w_ih, w_hh, b_ih, b_hh]
    if has_h0:
        h0 = init_hidden.reshape(B, H).astype(jnp.float32)
        args.append(jnp.pad(h0, ((0, 0), (0, Hp - H))))                  # (B, Hp)

    # Batch tile: multiple of 8, capped for vreg pressure, and split so large
    # batches produce >= 2 "parallel" blocks (both v7x TensorCores get work).
    bm = min(block_b, _round_up(B, 8))
    if B > 8:
        bm = min(bm, _round_up(pl.cdiv(B, 2), 8))
    # Time tile: multiple of 8 (or the full F when F < 8).
    if F <= 8:
        t_blk = F
    else:
        t_blk = min(_round_up(block_t, 8), _round_up(F, 8))

    grid = (pl.cdiv(B, bm), pl.cdiv(F, t_blk))

    def const(shape):
        return pl.BlockSpec(shape, lambda b, t: (0, 0))

    in_specs = [
        pl.BlockSpec((bm, 1), lambda b, t: (b, 0)),             # lengths (t-invariant)
        pl.BlockSpec((bm, t_blk, E), lambda b, t: (b, t, 0)),   # x, native (B,F,E) layout
        const((E, 3 * Hp)),                                     # W_ih (VMEM-resident)
        const((Hp, 3 * Hp)),                                    # W_hh (VMEM-resident)
        const((1, 3 * Hp)),                                     # b_ih
        const((1, 3 * Hp)),                                     # b_hh
    ]
    if has_h0:
        in_specs.append(pl.BlockSpec((bm, Hp), lambda b, t: (b, 0)))

    out_shapes, out_specs = [], []
    if return_all_hidden:
        out_shapes.append(jax.ShapeDtypeStruct((B, F, Hp), x.dtype))
        out_specs.append(pl.BlockSpec((bm, t_blk, Hp), lambda b, t: (b, t, 0)))
    out_shapes.append(jax.ShapeDtypeStruct((B, Hp), x.dtype))
    out_specs.append(pl.BlockSpec((bm, Hp), lambda b, t: (b, 0)))

    outs = pl.pallas_call(
        functools.partial(_gru_kernel, t_blk=t_blk, h_pad=Hp,
                          has_h0=has_h0, emit_all=return_all_hidden),
        out_shape=tuple(out_shapes),
        grid_spec=pltpu.PrefetchScalarGridSpec(
            num_scalar_prefetch=0,
            grid=grid,
            in_specs=in_specs,
            out_specs=out_specs,
            scratch_shapes=[pltpu.VMEM((bm, Hp), jnp.float32)],   # carried hidden
        ),
        compiler_params=pltpu.CompilerParams(
            dimension_semantics=("parallel", "arbitrary")),
    )(*args)

    if return_all_hidden:
        # TODO(synk): PyTorch returns a PackedSequence here; we return the padded
        # (B, F, H) states (steps >= length carry the last valid hidden state).
        return outs[0][:, :, :H]
    return outs[-1][:, :H]


def _reference(x, x_mask, params, init_hidden=None):
    """Pure-JAX reference matching the PyTorch packed-GRU forward."""
    B, F, E = x.shape
    H = params["w_hh"].shape[0]
    lengths = jnp.maximum(jnp.sum(x_mask.astype(jnp.int32), axis=-1), 1)
    upd = jnp.arange(F)[None, :] < lengths[:, None]
    h = (jnp.zeros((B, H), jnp.float32) if init_hidden is None
         else init_hidden.reshape(B, H).astype(jnp.float32))
    w_ih, w_hh = params["w_ih"], params["w_hh"]
    b_ih, b_hh = params["b_ih"], params["b_hh"]
    hi = jax.lax.Precision.HIGHEST

    def step(h, inp):
        x_t, u_t = inp
        gi = jnp.dot(x_t, w_ih, precision=hi) + b_ih
        gh = jnp.dot(h, w_hh, precision=hi) + b_hh
        r = _sigmoid(gi[:, :H] + gh[:, :H])
        z = _sigmoid(gi[:, H:2 * H] + gh[:, H:2 * H])
        n = jnp.tanh(gi[:, 2 * H:] + r * gh[:, 2 * H:])
        h_c = (1.0 - z) * n + z * h
        h_new = jnp.where(u_t[:, None], h_c, h)
        return h_new, h_new

    x_tm = jnp.transpose(x, (1, 0, 2)).astype(jnp.float32)
    h_last, ys = jax.lax.scan(step, h, (x_tm, upd.T))
    return jnp.transpose(ys, (1, 0, 2)), h_last


if __name__ == "__main__":
    key = jax.random.PRNGKey(0)

    def make_case(k, B, F, E, H, lens):
        ks = jax.random.split(k, 5)
        params = {
            "w_ih": jax.random.normal(ks[0], (E, 3 * H), jnp.float32) * 0.1,
            "w_hh": jax.random.normal(ks[1], (H, 3 * H), jnp.float32) * 0.1,
            "b_ih": jax.random.normal(ks[2], (3 * H,), jnp.float32) * 0.1,
            "b_hh": jax.random.normal(ks[3], (3 * H,), jnp.float32) * 0.1,
        }
        x = jax.random.normal(ks[4], (B, F, E), jnp.float32)
        x_mask = (jnp.arange(F)[None, :] < lens[:, None]).astype(jnp.float32)
        return params, x, x_mask

    # Case 1: shapes consistent with the module (batch=4, seq F=8,
    # input_feat_dim=32, output_feat_dim=32), incl. a zero-length row.
    k1, k2, key = jax.random.split(key, 3)
    B, F, E, H = 4, 8, 32, 32
    params, x, x_mask = make_case(k1, B, F, E, H, jnp.array([8, 5, 3, 0], jnp.int32))
    y_ref, h_ref = _reference(x, x_mask, params)

    # default path (last hidden only), bf16 MXU inputs
    h_last = jax.block_until_ready(gru_encoder(x, x_mask, params))
    assert h_last.shape == (B, H)
    assert jnp.allclose(h_last, h_ref, atol=3e-2, rtol=3e-2), "bf16 last-hidden mismatch"

    # f32 MXU path: all hidden states + explicit init_hidden (tight check)
    h0 = jax.random.normal(k2, (1, B, H), jnp.float32) * 0.1
    y_all = gru_encoder(x, x_mask, params, init_hidden=h0,
                        return_all_hidden=True, mxu_dtype=jnp.float32)
    h_last32 = gru_encoder(x, x_mask, params, init_hidden=h0, mxu_dtype=jnp.float32)
    y_all, h_last32 = jax.block_until_ready((y_all, h_last32))
    y_ref_h0, h_ref_h0 = _reference(x, x_mask, params, init_hidden=h0)
    assert y_all.shape == (B, F, H)
    assert jnp.allclose(y_all, y_ref_h0, atol=1e-4, rtol=1e-4), "all-hidden mismatch"
    assert jnp.allclose(h_last32, h_ref_h0, atol=1e-4, rtol=1e-4), "f32 last-hidden mismatch"

    # Case 2: ragged shapes — partial batch/time blocks, non-128 hidden, carry
    # across multiple time blocks.
    k3, _ = jax.random.split(key)
    B2, F2, E2, H2 = 5, 19, 40, 48
    lens2 = jnp.array([19, 11, 7, 1, 0], jnp.int32)
    params2, x2, m2 = make_case(k3, B2, F2, E2, H2, lens2)
    y2_ref, h2_ref = _reference(x2, m2, params2)
    h2 = jax.block_until_ready(gru_encoder(x2, m2, params2, mxu_dtype=jnp.float32))
    y2 = jax.block_until_ready(gru_encoder(x2, m2, params2, return_all_hidden=True,
                                           mxu_dtype=jnp.float32))
    assert h2.shape == (B2, H2) and y2.shape == (B2, F2, H2)
    assert jnp.allclose(h2, h2_ref, atol=1e-4, rtol=1e-4), "case2 last-hidden mismatch"
    assert jnp.allclose(y2, y2_ref, atol=1e-4, rtol=1e-4), "case2 all-hidden mismatch"

    print("KERNEL_OK")
</pallas_src>

<mosaic_0001>
module attributes {stable_mosaic.version = 11 : i64} {
  func.func @_gru_kernel(%arg0: i32, %arg1: i32, %arg2: memref<8x1xi32, #tpu.memory_space<vmem>>, %arg3: memref<8x8x32xbf16, #tpu.memory_space<vmem>>, %arg4: memref<32x384xbf16, #tpu.memory_space<vmem>>, %arg5: memref<128x384xbf16, #tpu.memory_space<vmem>>, %arg6: memref<1x384xf32, #tpu.memory_space<vmem>>, %arg7: memref<1x384xf32, #tpu.memory_space<vmem>>, %arg8: memref<8x128xf32, #tpu.memory_space<vmem>>, %arg9: memref<8x128xf32, #tpu.memory_space<vmem>>) attributes {dimension_semantics = [#tpu.dimension_semantics<parallel>, #tpu.dimension_semantics<arbitrary>], iteration_bounds = array<i64: 1, 1>, scalar_prefetch = 0 : i64, scratch_operands = 1 : i64, tpu.core_type = #tpu.core_type<tc>, window_params = [{transform_indices = @transform_0, window_bounds = array<i64: 8, 1>}, {transform_indices = @transform_1, window_bounds = array<i64: 8, 8, 32>}, {pipeline_mode = #tpu.pipeline_mode<synchronous>, transform_indices = @transform_2, window_bounds = array<i64: 32, 384>}, {pipeline_mode = #tpu.pipeline_mode<synchronous>, transform_indices = @transform_3, window_bounds = array<i64: 128, 384>}, {pipeline_mode = #tpu.pipeline_mode<synchronous>, transform_indices = @transform_4, window_bounds = array<i64: 1, 384>}, {pipeline_mode = #tpu.pipeline_mode<synchronous>, transform_indices = @transform_5, window_bounds = array<i64: 1, 384>}, {transform_indices = @transform_6, window_bounds = array<i64: 8, 128>}]} {
    %c0_i32 = arith.constant 0 : i32
    %0 = arith.cmpi eq, %arg1, %c0_i32 : i32
    %1 = arith.extui %0 : i1 to i32
    %c0_i32_0 = arith.constant 0 : i32
    %2 = arith.cmpi ne, %1, %c0_i32_0 : i32
    scf.if %2 {
      %cst_105 = arith.constant 0.000000e+00 : f32
      %374 = vector.broadcast %cst_105 : f32 to vector<8x128xf32>
      %c0_106 = arith.constant 0 : index
      %c0_107 = arith.constant 0 : index
      %375 = vector.load %arg9[%c0_106, %c0_107] : memref<8x128xf32, #tpu.memory_space<vmem>>, vector<8x128xf32>
      tpu.vector_store %arg9[%c0_106, %c0_107], %374 {strides = array<i32>} : memref<8x128xf32, #tpu.memory_space<vmem>>, vector<8x128xf32>,
    } else {
    }
    %c0 = arith.constant 0 : index
    %c0_1 = arith.constant 0 : index
    %3 = vector.load %arg2[%c0, %c0_1] : memref<8x1xi32, #tpu.memory_space<vmem>>, vector<8x1xi32>
    %c0_2 = arith.constant 0 : index
    %c0_3 = arith.constant 0 : index
    %4 = vector.load %arg4[%c0_2, %c0_3] : memref<32x384xbf16, #tpu.memory_space<vmem>>, vector<32x384xbf16>
    %c0_4 = arith.constant 0 : index
    %c0_5 = arith.constant 0 : index
    %5 = vector.load %arg5[%c0_4, %c0_5] : memref<128x384xbf16, #tpu.memory_space<vmem>>, vector<128x384xbf16>
    %c0_6 = arith.constant 0 : index
    %c0_7 = arith.constant 0 : index
    %6 = vector.load %arg6[%c0_6, %c0_7] : memref<1x384xf32, #tpu.memory_space<vmem>>, vector<1x384xf32>
    %c0_8 = arith.constant 0 : index
    %c0_9 = arith.constant 0 : index
    %7 = vector.load %arg7[%c0_8, %c0_9] : memref<1x384xf32, #tpu.memory_space<vmem>>, vector<1x384xf32>
    %c0_10 = arith.constant 0 : index
    %c0_11 = arith.constant 0 : index
    %8 = vector.load %arg9[%c0_10, %c0_11] : memref<8x128xf32, #tpu.memory_space<vmem>>, vector<8x128xf32>
    %c8_i32 = arith.constant 8 : i32
    %9 = arith.muli %arg1, %c8_i32 : i32
    %c0_12 = arith.constant 0 : index
    %c0_13 = arith.constant 0 : index
    %c0_14 = arith.constant 0 : index
    %10 = vector.load %arg3[%c0_12, %c0_13, %c0_14] : memref<8x8x32xbf16, #tpu.memory_space<vmem>>, vector<8x1x32xbf16>
    %11 = vector.shape_cast %10 : vector<8x1x32xbf16> to vector<8x32xbf16>
    %cst = arith.constant dense<0.000000e+00> : vector<8x384xf32>
    %12 = tpu.matmul %11, %4, %cst {dimension_numbers = #tpu.dot_dimension_numbers<[1], [0], [0], [1], [0, 0, 1, 1], [], []>} : vector<8x32xbf16>, vector<32x384xbf16>, vector<8x384xf32> -> vector<8x384xf32>
    %13 = vector.broadcast %6 : vector<1x384xf32> to vector<8x384xf32>
    %14 = arith.addf %12, %13 : vector<8x384xf32>
    %15 = arith.truncf %8 : vector<8x128xf32> to vector<8x128xbf16>
    %cst_15 = arith.constant dense<0.000000e+00> : vector<8x384xf32>
    %16 = tpu.matmul %15, %5, %cst_15 {dimension_numbers = #tpu.dot_dimension_numbers<[1], [0], [0], [1], [0, 0, 1, 1], [], []>} : vector<8x128xbf16>, vector<128x384xbf16>, vector<8x384xf32> -> vector<8x384xf32>
    %17 = vector.broadcast %7 : vector<1x384xf32> to vector<8x384xf32>
    %18 = arith.addf %16, %17 : vector<8x384xf32>
    %19 = vector.extract_strided_slice %14 {offsets = [0, 0], sizes = [8, 128], strides = [1, 1]} : vector<8x384xf32> to vector<8x128xf32>
    %20 = vector.extract_strided_slice %18 {offsets = [0, 0], sizes = [8, 128], strides = [1, 1]} : vector<8x384xf32> to vector<8x128xf32>
    %21 = arith.addf %19, %20 : vector<8x128xf32>
    %cst_16 = arith.constant 5.000000e-01 : f32
    %22 = vector.broadcast %cst_16 : f32 to vector<8x128xf32>
    %23 = arith.mulf %22, %21 : vector<8x128xf32>
    %24 = math.tanh %23 : vector<8x128xf32>
    %cst_17 = arith.constant 1.000000e+00 : f32
    %25 = vector.broadcast %cst_17 : f32 to vector<8x128xf32>
    %26 = arith.addf %24, %25 : vector<8x128xf32>
    %cst_18 = arith.constant 5.000000e-01 : f32
    %27 = vector.broadcast %cst_18 : f32 to vector<8x128xf32>
    %28 = arith.mulf %27, %26 : vector<8x128xf32>
    %29 = vector.extract_strided_slice %14 {offsets = [0, 128], sizes = [8, 128], strides = [1, 1]} : vector<8x384xf32> to vector<8x128xf32>
    %30 = vector.extract_strided_slice %18 {offsets = [0, 128], sizes = [8, 128], strides = [1, 1]} : vector<8x384xf32> to vector<8x128xf32>
    %31 = arith.addf %29, %30 : vector<8x128xf32>
    %cst_19 = arith.constant 5.000000e-01 : f32
    %32 = vector.broadcast %cst_19 : f32 to vector<8x128xf32>
    %33 = arith.mulf %32, %31 : vector<8x128xf32>
    %34 = math.tanh %33 : vector<8x128xf32>
    %cst_20 = arith.constant 1.000000e+00 : f32
    %35 = vector.broadcast %cst_20 : f32 to vector<8x128xf32>
    %36 = arith.addf %34, %35 : vector<8x128xf32>
    %cst_21 = arith.constant 5.000000e-01 : f32
    %37 = vector.broadcast %cst_21 : f32 to vector<8x128xf32>
    %38 = arith.mulf %37, %36 : vector<8x128xf32>
    %39 = vector.extract_strided_slice %14 {offsets = [0, 256], sizes = [8, 128], strides = [1, 1]} : vector<8x384xf32> to vector<8x128xf32>
    %40 = vector.extract_strided_slice %18 {offsets = [0, 256], sizes = [8, 128], strides = [1, 1]} : vector<8x384xf32> to vector<8x128xf32>
    %41 = arith.mulf %28, %40 : vector<8x128xf32>
    %42 = arith.addf %39, %41 : vector<8x128xf32>
    %43 = math.tanh %42 : vector<8x128xf32>
    %cst_22 = arith.constant 1.000000e+00 : f32
    %44 = vector.broadcast %cst_22 : f32 to vector<8x128xf32>
    %45 = arith.subf %44, %38 : vector<8x128xf32>
    %46 = arith.mulf %45, %43 : vector<8x128xf32>
    %47 = arith.mulf %38, %8 : vector<8x128xf32>
    %48 = arith.addf %46, %47 : vector<8x128xf32>
    %c0_i32_23 = arith.constant 0 : i32
    %49 = arith.addi %9, %c0_i32_23 : i32
    %50 = vector.broadcast %49 : i32 to vector<8x1xi32>
    %51 = arith.cmpi slt, %50, %3 : vector<8x1xi32>
    %52 = vector.shape_cast %51 : vector<8x1xi1> to vector<8x1xi1>
    %53 = vector.broadcast %52 : vector<8x1xi1> to vector<8x128xi1>
    %54 = arith.select %53, %48, %8 : vector<8x128xi1>, vector<8x128xf32>
    %c0_24 = arith.constant 0 : index
    %c1 = arith.constant 1 : index
    %c0_25 = arith.constant 0 : index
    %55 = vector.load %arg3[%c0_24, %c1, %c0_25] : memref<8x8x32xbf16, #tpu.memory_space<vmem>>, vector<8x1x32xbf16>
    %56 = vector.shape_cast %55 : vector<8x1x32xbf16> to vector<8x32xbf16>
    %cst_26 = arith.constant dense<0.000000e+00> : vector<8x384xf32>
    %57 = tpu.matmul %56, %4, %cst_26 {dimension_numbers = #tpu.dot_dimension_numbers<[1], [0], [0], [1], [0, 0, 1, 1], [], []>} : vector<8x32xbf16>, vector<32x384xbf16>, vector<8x384xf32> -> vector<8x384xf32>
    %58 = vector.broadcast %6 : vector<1x384xf32> to vector<8x384xf32>
    %59 = arith.addf %57, %58 : vector<8x384xf32>
    %60 = arith.truncf %54 : vector<8x128xf32> to vector<8x128xbf16>
    %cst_27 = arith.constant dense<0.000000e+00> : vector<8x384xf32>
    %61 = tpu.matmul %60, %5, %cst_27 {dimension_numbers = #tpu.dot_dimension_numbers<[1], [0], [0], [1], [0, 0, 1, 1], [], []>} : vector<8x128xbf16>, vector<128x384xbf16>, vector<8x384xf32> -> vector<8x384xf32>
    %62 = vector.broadcast %7 : vector<1x384xf32> to vector<8x384xf32>
    %63 = arith.addf %61, %62 : vector<8x384xf32>
    %64 = vector.extract_strided_slice %59 {offsets = [0, 0], sizes = [8, 128], strides = [1, 1]} : vector<8x384xf32> to vector<8x128xf32>
    %65 = vector.extract_strided_slice %63 {offsets = [0, 0], sizes = [8, 128], strides = [1, 1]} : vector<8x384xf32> to vector<8x128xf32>
    %66 = arith.addf %64, %65 : vector<8x128xf32>
    %cst_28 = arith.constant 5.000000e-01 : f32
    %67 = vector.broadcast %cst_28 : f32 to vector<8x128xf32>
    %68 = arith.mulf %67, %66 : vector<8x128xf32>
    %69 = math.tanh %68 : vector<8x128xf32>
    %cst_29 = arith.constant 1.000000e+00 : f32
    %70 = vector.broadcast %cst_29 : f32 to vector<8x128xf32>
    %71 = arith.addf %69, %70 : vector<8x128xf32>
    %cst_30 = arith.constant 5.000000e-01 : f32
    %72 = vector.broadcast %cst_30 : f32 to vector<8x128xf32>
    %73 = arith.mulf %72, %71 : vector<8x128xf32>
    %74 = vector.extract_strided_slice %59 {offsets = [0, 128], sizes = [8, 128], strides = [1, 1]} : vector<8x384xf32> to vector<8x128xf32>
    %75 = vector.extract_strided_slice %63 {offsets = [0, 128], sizes = [8, 128], strides = [1, 1]} : vector<8x384xf32> to vector<8x128xf32>
    %76 = arith.addf %74, %75 : vector<8x128xf32>
    %cst_31 = arith.constant 5.000000e-01 : f32
    %77 = vector.broadcast %cst_31 : f32 to vector<8x128xf32>
    %78 = arith.mulf %77, %76 : vector<8x128xf32>
    %79 = math.tanh %78 : vector<8x128xf32>
    %cst_32 = arith.constant 1.000000e+00 : f32
    %80 = vector.broadcast %cst_32 : f32 to vector<8x128xf32>
    %81 = arith.addf %79, %80 : vector<8x128xf32>
    %cst_33 = arith.constant 5.000000e-01 : f32
    %82 = vector.broadcast %cst_33 : f32 to vector<8x128xf32>
    %83 = arith.mulf %82, %81 : vector<8x128xf32>
    %84 = vector.extract_strided_slice %59 {offsets = [0, 256], sizes = [8, 128], strides = [1, 1]} : vector<8x384xf32> to vector<8x128xf32>
    %85 = vector.extract_strided_slice %63 {offsets = [0, 256], sizes = [8, 128], strides = [1, 1]} : vector<8x384xf32> to vector<8x128xf32>
    %86 = arith.mulf %73, %85 : vector<8x128xf32>
    %87 = arith.addf %84, %86 : vector<8x128xf32>
    %88 = math.tanh %87 : vector<8x128xf32>
    %cst_34 = arith.constant 1.000000e+00 : f32
    %89 = vector.broadcast %cst_34 : f32 to vector<8x128xf32>
    %90 = arith.subf %89, %83 : vector<8x128xf32>
    %91 = arith.mulf %90, %88 : vector<8x128xf32>
    %92 = arith.mulf %83, %54 : vector<8x128xf32>
    %93 = arith.addf %91, %92 : vector<8x128xf32>
    %c1_i32 = arith.constant 1 : i32
    %94 = arith.addi %9, %c1_i32 : i32
    %95 = vector.broadcast %94 : i32 to vector<8x1xi32>
    %96 = arith.cmpi slt, %95, %3 : vector<8x1xi32>
    %97 = vector.shape_cast %96 : vector<8x1xi1> to vector<8x1xi1>
    %98 = vector.broadcast %97 : vector<8x1xi1> to vector<8x128xi1>
    %99 = arith.select %98, %93, %54 : vector<8x128xi1>, vector<8x128xf32>
    %c0_35 = arith.constant 0 : index
    %c2 = arith.constant 2 : index
    %c0_36 = arith.constant 0 : index
    %100 = vector.load %arg3[%c0_35, %c2, %c0_36] : memref<8x8x32xbf16, #tpu.memory_space<vmem>>, vector<8x1x32xbf16>
    %101 = vector.shape_cast %100 : vector<8x1x32xbf16> to vector<8x32xbf16>
    %cst_37 = arith.constant dense<0.000000e+00> : vector<8x384xf32>
    %102 = tpu.matmul %101, %4, %cst_37 {dimension_numbers = #tpu.dot_dimension_numbers<[1], [0], [0], [1], [0, 0, 1, 1], [], []>} : vector<8x32xbf16>, vector<32x384xbf16>, vector<8x384xf32> -> vector<8x384xf32>
    %103 = vector.broadcast %6 : vector<1x384xf32> to vector<8x384xf32>
    %104 = arith.addf %102, %103 : vector<8x384xf32>
    %105 = arith.truncf %99 : vector<8x128xf32> to vector<8x128xbf16>
    %cst_38 = arith.constant dense<0.000000e+00> : vector<8x384xf32>
    %106 = tpu.matmul %105, %5, %cst_38 {dimension_numbers = #tpu.dot_dimension_numbers<[1], [0], [0], [1], [0, 0, 1, 1], [], []>} : vector<8x128xbf16>, vector<128x384xbf16>, vector<8x384xf32> -> vector<8x384xf32>
    %107 = vector.broadcast %7 : vector<1x384xf32> to vector<8x384xf32>
    %108 = arith.addf %106, %107 : vector<8x384xf32>
    %109 = vector.extract_strided_slice %104 {offsets = [0, 0], sizes = [8, 128], strides = [1, 1]} : vector<8x384xf32> to vector<8x128xf32>
    %110 = vector.extract_strided_slice %108 {offsets = [0, 0], sizes = [8, 128], strides = [1, 1]} : vector<8x384xf32> to vector<8x128xf32>
    %111 = arith.addf %109, %110 : vector<8x128xf32>
    %cst_39 = arith.constant 5.000000e-01 : f32
    %112 = vector.broadcast %cst_39 : f32 to vector<8x128xf32>
    %113 = arith.mulf %112, %111 : vector<8x128xf32>
    %114 = math.tanh %113 : vector<8x128xf32>
    %cst_40 = arith.constant 1.000000e+00 : f32
    %115 = vector.broadcast %cst_40 : f32 to vector<8x128xf32>
    %116 = arith.addf %114, %115 : vector<8x128xf32>
    %cst_41 = arith.constant 5.000000e-01 : f32
    %117 = vector.broadcast %cst_41 : f32 to vector<8x128xf32>
    %118 = arith.mulf %117, %116 : vector<8x128xf32>
    %119 = vector.extract_strided_slice %104 {offsets = [0, 128], sizes = [8, 128], strides = [1, 1]} : vector<8x384xf32> to vector<8x128xf32>
    %120 = vector.extract_strided_slice %108 {offsets = [0, 128], sizes = [8, 128], strides = [1, 1]} : vector<8x384xf32> to vector<8x128xf32>
    %121 = arith.addf %119, %120 : vector<8x128xf32>
    %cst_42 = arith.constant 5.000000e-01 : f32
    %122 = vector.broadcast %cst_42 : f32 to vector<8x128xf32>
    %123 = arith.mulf %122, %121 : vector<8x128xf32>
    %124 = math.tanh %123 : vector<8x128xf32>
    %cst_43 = arith.constant 1.000000e+00 : f32
    %125 = vector.broadcast %cst_43 : f32 to vector<8x128xf32>
    %126 = arith.addf %124, %125 : vector<8x128xf32>
    %cst_44 = arith.constant 5.000000e-01 : f32
    %127 = vector.broadcast %cst_44 : f32 to vector<8x128xf32>
    %128 = arith.mulf %127, %126 : vector<8x128xf32>
    %129 = vector.extract_strided_slice %104 {offsets = [0, 256], sizes = [8, 128], strides = [1, 1]} : vector<8x384xf32> to vector<8x128xf32>
    %130 = vector.extract_strided_slice %108 {offsets = [0, 256], sizes = [8, 128], strides = [1, 1]} : vector<8x384xf32> to vector<8x128xf32>
    %131 = arith.mulf %118, %130 : vector<8x128xf32>
    %132 = arith.addf %129, %131 : vector<8x128xf32>
    %133 = math.tanh %132 : vector<8x128xf32>
    %cst_45 = arith.constant 1.000000e+00 : f32
    %134 = vector.broadcast %cst_45 : f32 to vector<8x128xf32>
    %135 = arith.subf %134, %128 : vector<8x128xf32>
    %136 = arith.mulf %135, %133 : vector<8x128xf32>
    %137 = arith.mulf %128, %99 : vector<8x128xf32>
    %138 = arith.addf %136, %137 : vector<8x128xf32>
    %c2_i32 = arith.constant 2 : i32
    %139 = arith.addi %9, %c2_i32 : i32
    %140 = vector.broadcast %139 : i32 to vector<8x1xi32>
    %141 = arith.cmpi slt, %140, %3 : vector<8x1xi32>
    %142 = vector.shape_cast %141 : vector<8x1xi1> to vector<8x1xi1>
    %143 = vector.broadcast %142 : vector<8x1xi1> to vector<8x128xi1>
    %144 = arith.select %143, %138, %99 : vector<8x128xi1>, vector<8x128xf32>
    %c0_46 = arith.constant 0 : index
    %c3 = arith.constant 3 : index
    %c0_47 = arith.constant 0 : index
    %145 = vector.load %arg3[%c0_46, %c3, %c0_47] : memref<8x8x32xbf16, #tpu.memory_space<vmem>>, vector<8x1x32xbf16>
    %146 = vector.shape_cast %145 : vector<8x1x32xbf16> to vector<8x32xbf16>
    %cst_48 = arith.constant dense<0.000000e+00> : vector<8x384xf32>
    %147 = tpu.matmul %146, %4, %cst_48 {dimension_numbers = #tpu.dot_dimension_numbers<[1], [0], [0], [1], [0, 0, 1, 1], [], []>} : vector<8x32xbf16>, vector<32x384xbf16>, vector<8x384xf32> -> vector<8x384xf32>
    %148 = vector.broadcast %6 : vector<1x384xf32> to vector<8x384xf32>
    %149 = arith.addf %147, %148 : vector<8x384xf32>
    %150 = arith.truncf %144 : vector<8x128xf32> to vector<8x128xbf16>
    %cst_49 = arith.constant dense<0.000000e+00> : vector<8x384xf32>
    %151 = tpu.matmul %150, %5, %cst_49 {dimension_numbers = #tpu.dot_dimension_numbers<[1], [0], [0], [1], [0, 0, 1, 1], [], []>} : vector<8x128xbf16>, vector<128x384xbf16>, vector<8x384xf32> -> vector<8x384xf32>
    %152 = vector.broadcast %7 : vector<1x384xf32> to vector<8x384xf32>
    %153 = arith.addf %151, %152 : vector<8x384xf32>
    %154 = vector.extract_strided_slice %149 {offsets = [0, 0], sizes = [8, 128], strides = [1, 1]} : vector<8x384xf32> to vector<8x128xf32>
    %155 = vector.extract_strided_slice %153 {offsets = [0, 0], sizes = [8, 128], strides = [1, 1]} : vector<8x384xf32> to vector<8x128xf32>
    %156 = arith.addf %154, %155 : vector<8x128xf32>
    %cst_50 = arith.constant 5.000000e-01 : f32
    %157 = vector.broadcast %cst_50 : f32 to vector<8x128xf32>
    %158 = arith.mulf %157, %156 : vector<8x128xf32>
    %159 = math.tanh %158 : vector<8x128xf32>
    %cst_51 = arith.constant 1.000000e+00 : f32
    %160 = vector.broadcast %cst_51 : f32 to vector<8x128xf32>
    %161 = arith.addf %159, %160 : vector<8x128xf32>
    %cst_52 = arith.constant 5.000000e-01 : f32
    %162 = vector.broadcast %cst_52 : f32 to vector<8x128xf32>
    %163 = arith.mulf %162, %161 : vector<8x128xf32>
    %164 = vector.extract_strided_slice %149 {offsets = [0, 128], sizes = [8, 128], strides = [1, 1]} : vector<8x384xf32> to vector<8x128xf32>
    %165 = vector.extract_strided_slice %153 {offsets = [0, 128], sizes = [8, 128], strides = [1, 1]} : vector<8x384xf32> to vector<8x128xf32>
    %166 = arith.addf %164, %165 : vector<8x128xf32>
    %cst_53 = arith.constant 5.000000e-01 : f32
    %167 = vector.broadcast %cst_53 : f32 to vector<8x128xf32>
    %168 = arith.mulf %167, %166 : vector<8x128xf32>
    %169 = math.tanh %168 : vector<8x128xf32>
    %cst_54 = arith.constant 1.000000e+00 : f32
    %170 = vector.broadcast %cst_54 : f32 to vector<8x128xf32>
    %171 = arith.addf %169, %170 : vector<8x128xf32>
    %cst_55 = arith.constant 5.000000e-01 : f32
    %172 = vector.broadcast %cst_55 : f32 to vector<8x128xf32>
    %173 = arith.mulf %172, %171 : vector<8x128xf32>
    %174 = vector.extract_strided_slice %149 {offsets = [0, 256], sizes = [8, 128], strides = [1, 1]} : vector<8x384xf32> to vector<8x128xf32>
    %175 = vector.extract_strided_slice %153 {offsets = [0, 256], sizes = [8, 128], strides = [1, 1]} : vector<8x384xf32> to vector<8x128xf32>
    %176 = arith.mulf %163, %175 : vector<8x128xf32>
    %177 = arith.addf %174, %176 : vector<8x128xf32>
    %178 = math.tanh %177 : vector<8x128xf32>
    %cst_56 = arith.constant 1.000000e+00 : f32
    %179 = vector.broadcast %cst_56 : f32 to vector<8x128xf32>
    %180 = arith.subf %179, %173 : vector<8x128xf32>
    %181 = arith.mulf %180, %178 : vector<8x128xf32>
    %182 = arith.mulf %173, %144 : vector<8x128xf32>
    %183 = arith.addf %181, %182 : vector<8x128xf32>
    %c3_i32 = arith.constant 3 : i32
    %184 = arith.addi %9, %c3_i32 : i32
    %185 = vector.broadcast %184 : i32 to vector<8x1xi32>
    %186 = arith.cmpi slt, %185, %3 : vector<8x1xi32>
    %187 = vector.shape_cast %186 : vector<8x1xi1> to vector<8x1xi1>
    %188 = vector.broadcast %187 : vector<8x1xi1> to vector<8x128xi1>
    %189 = arith.select %188, %183, %144 : vector<8x128xi1>, vector<8x128xf32>
    %c0_57 = arith.constant 0 : index
    %c4 = arith.constant 4 : index
    %c0_58 = arith.constant 0 : index
    %190 = vector.load %arg3[%c0_57, %c4, %c0_58] : memref<8x8x32xbf16, #tpu.memory_space<vmem>>, vector<8x1x32xbf16>
    %191 = vector.shape_cast %190 : vector<8x1x32xbf16> to vector<8x32xbf16>
    %cst_59 = arith.constant dense<0.000000e+00> : vector<8x384xf32>
    %192 = tpu.matmul %191, %4, %cst_59 {dimension_numbers = #tpu.dot_dimension_numbers<[1], [0], [0], [1], [0, 0, 1, 1], [], []>} : vector<8x32xbf16>, vector<32x384xbf16>, vector<8x384xf32> -> vector<8x384xf32>
    %193 = vector.broadcast %6 : vector<1x384xf32> to vector<8x384xf32>
    %194 = arith.addf %192, %193 : vector<8x384xf32>
    %195 = arith.truncf %189 : vector<8x128xf32> to vector<8x128xbf16>
    %cst_60 = arith.constant dense<0.000000e+00> : vector<8x384xf32>
    %196 = tpu.matmul %195, %5, %cst_60 {dimension_numbers = #tpu.dot_dimension_numbers<[1], [0], [0], [1], [0, 0, 1, 1], [], []>} : vector<8x128xbf16>, vector<128x384xbf16>, vector<8x384xf32> -> vector<8x384xf32>
    %197 = vector.broadcast %7 : vector<1x384xf32> to vector<8x384xf32>
    %198 = arith.addf %196, %197 : vector<8x384xf32>
    %199 = vector.extract_strided_slice %194 {offsets = [0, 0], sizes = [8, 128], strides = [1, 1]} : vector<8x384xf32> to vector<8x128xf32>
    %200 = vector.extract_strided_slice %198 {offsets = [0, 0], sizes = [8, 128], strides = [1, 1]} : vector<8x384xf32> to vector<8x128xf32>
    %201 = arith.addf %199, %200 : vector<8x128xf32>
    %cst_61 = arith.constant 5.000000e-01 : f32
    %202 = vector.broadcast %cst_61 : f32 to vector<8x128xf32>
    %203 = arith.mulf %202, %201 : vector<8x128xf32>
    %204 = math.tanh %203 : vector<8x128xf32>
    %cst_62 = arith.constant 1.000000e+00 : f32
    %205 = vector.broadcast %cst_62 : f32 to vector<8x128xf32>
    %206 = arith.addf %204, %205 : vector<8x128xf32>
    %cst_63 = arith.constant 5.000000e-01 : f32
    %207 = vector.broadcast %cst_63 : f32 to vector<8x128xf32>
    %208 = arith.mulf %207, %206 : vector<8x128xf32>
    %209 = vector.extract_strided_slice %194 {offsets = [0, 128], sizes = [8, 128], strides = [1, 1]} : vector<8x384xf32> to vector<8x128xf32>
    %210 = vector.extract_strided_slice %198 {offsets = [0, 128], sizes = [8, 128], strides = [1, 1]} : vector<8x384xf32> to vector<8x128xf32>
    %211 = arith.addf %209, %210 : vector<8x128xf32>
    %cst_64 = arith.constant 5.000000e-01 : f32
    %212 = vector.broadcast %cst_64 : f32 to vector<8x128xf32>
    %213 = arith.mulf %212, %211 : vector<8x128xf32>
    %214 = math.tanh %213 : vector<8x128xf32>
    %cst_65 = arith.constant 1.000000e+00 : f32
    %215 = vector.broadcast %cst_65 : f32 to vector<8x128xf32>
    %216 = arith.addf %214, %215 : vector<8x128xf32>
    %cst_66 = arith.constant 5.000000e-01 : f32
    %217 = vector.broadcast %cst_66 : f32 to vector<8x128xf32>
    %218 = arith.mulf %217, %216 : vector<8x128xf32>
    %219 = vector.extract_strided_slice %194 {offsets = [0, 256], sizes = [8, 128], strides = [1, 1]} : vector<8x384xf32> to vector<8x128xf32>
    %220 = vector.extract_strided_slice %198 {offsets = [0, 256], sizes = [8, 128], strides = [1, 1]} : vector<8x384xf32> to vector<8x128xf32>
    %221 = arith.mulf %208, %220 : vector<8x128xf32>
    %222 = arith.addf %219, %221 : vector<8x128xf32>
    %223 = math.tanh %222 : vector<8x128xf32>
    %cst_67 = arith.constant 1.000000e+00 : f32
    %224 = vector.broadcast %cst_67 : f32 to vector<8x128xf32>
    %225 = arith.subf %224, %218 : vector<8x128xf32>
    %226 = arith.mulf %225, %223 : vector<8x128xf32>
    %227 = arith.mulf %218, %189 : vector<8x128xf32>
    %228 = arith.addf %226, %227 : vector<8x128xf32>
    %c4_i32 = arith.constant 4 : i32
    %229 = arith.addi %9, %c4_i32 : i32
    %230 = vector.broadcast %229 : i32 to vector<8x1xi32>
    %231 = arith.cmpi slt, %230, %3 : vector<8x1xi32>
    %232 = vector.shape_cast %231 : vector<8x1xi1> to vector<8x1xi1>
    %233 = vector.broadcast %232 : vector<8x1xi1> to vector<8x128xi1>
    %234 = arith.select %233, %228, %189 : vector<8x128xi1>, vector<8x128xf32>
    %c0_68 = arith.constant 0 : index
    %c5 = arith.constant 5 : index
    %c0_69 = arith.constant 0 : index
    %235 = vector.load %arg3[%c0_68, %c5, %c0_69] : memref<8x8x32xbf16, #tpu.memory_space<vmem>>, vector<8x1x32xbf16>
    %236 = vector.shape_cast %235 : vector<8x1x32xbf16> to vector<8x32xbf16>
    %cst_70 = arith.constant dense<0.000000e+00> : vector<8x384xf32>
    %237 = tpu.matmul %236, %4, %cst_70 {dimension_numbers = #tpu.dot_dimension_numbers<[1], [0], [0], [1], [0, 0, 1, 1], [], []>} : vector<8x32xbf16>, vector<32x384xbf16>, vector<8x384xf32> -> vector<8x384xf32>
    %238 = vector.broadcast %6 : vector<1x384xf32> to vector<8x384xf32>
    %239 = arith.addf %237, %238 : vector<8x384xf32>
    %240 = arith.truncf %234 : vector<8x128xf32> to vector<8x128xbf16>
    %cst_71 = arith.constant dense<0.000000e+00> : vector<8x384xf32>
    %241 = tpu.matmul %240, %5, %cst_71 {dimension_numbers = #tpu.dot_dimension_numbers<[1], [0], [0], [1], [0, 0, 1, 1], [], []>} : vector<8x128xbf16>, vector<128x384xbf16>, vector<8x384xf32> -> vector<8x384xf32>
    %242 = vector.broadcast %7 : vector<1x384xf32> to vector<8x384xf32>
    %243 = arith.addf %241, %242 : vector<8x384xf32>
    %244 = vector.extract_strided_slice %239 {offsets = [0, 0], sizes = [8, 128], strides = [1, 1]} : vector<8x384xf32> to vector<8x128xf32>
    %245 = vector.extract_strided_slice %243 {offsets = [0, 0], sizes = [8, 128], strides = [1, 1]} : vector<8x384xf32> to vector<8x128xf32>
    %246 = arith.addf %244, %245 : vector<8x128xf32>
    %cst_72 = arith.constant 5.000000e-01 : f32
    %247 = vector.broadcast %cst_72 : f32 to vector<8x128xf32>
    %248 = arith.mulf %247, %246 : vector<8x128xf32>
    %249 = math.tanh %248 : vector<8x128xf32>
    %cst_73 = arith.constant 1.000000e+00 : f32
    %250 = vector.broadcast %cst_73 : f32 to vector<8x128xf32>
    %251 = arith.addf %249, %250 : vector<8x128xf32>
    %cst_74 = arith.constant 5.000000e-01 : f32
    %252 = vector.broadcast %cst_74 : f32 to vector<8x128xf32>
    %253 = arith.mulf %252, %251 : vector<8x128xf32>
    %254 = vector.extract_strided_slice %239 {offsets = [0, 128], sizes = [8, 128], strides = [1, 1]} : vector<8x384xf32> to vector<8x128xf32>
    %255 = vector.extract_strided_slice %243 {offsets = [0, 128], sizes = [8, 128], strides = [1, 1]} : vector<8x384xf32> to vector<8x128xf32>
    %256 = arith.addf %254, %255 : vector<8x128xf32>
    %cst_75 = arith.constant 5.000000e-01 : f32
    %257 = vector.broadcast %cst_75 : f32 to vector<8x128xf32>
    %258 = arith.mulf %257, %256 : vector<8x128xf32>
    %259 = math.tanh %258 : vector<8x128xf32>
    %cst_76 = arith.constant 1.000000e+00 : f32
    %260 = vector.broadcast %cst_76 : f32 to vector<8x128xf32>
    %261 = arith.addf %259, %260 : vector<8x128xf32>
    %cst_77 = arith.constant 5.000000e-01 : f32
    %262 = vector.broadcast %cst_77 : f32 to vector<8x128xf32>
    %263 = arith.mulf %262, %261 : vector<8x128xf32>
    %264 = vector.extract_strided_slice %239 {offsets = [0, 256], sizes = [8, 128], strides = [1, 1]} : vector<8x384xf32> to vector<8x128xf32>
    %265 = vector.extract_strided_slice %243 {offsets = [0, 256], sizes = [8, 128], strides = [1, 1]} : vector<8x384xf32> to vector<8x128xf32>
    %266 = arith.mulf %253, %265 : vector<8x128xf32>
    %267 = arith.addf %264, %266 : vector<8x128xf32>
    %268 = math.tanh %267 : vector<8x128xf32>
    %cst_78 = arith.constant 1.000000e+00 : f32
    %269 = vector.broadcast %cst_78 : f32 to vector<8x128xf32>
    %270 = arith.subf %269, %263 : vector<8x128xf32>
    %271 = arith.mulf %270, %268 : vector<8x128xf32>
    %272 = arith.mulf %263, %234 : vector<8x128xf32>
    %273 = arith.addf %271, %272 : vector<8x128xf32>
    %c5_i32 = arith.constant 5 : i32
    %274 = arith.addi %9, %c5_i32 : i32
    %275 = vector.broadcast %274 : i32 to vector<8x1xi32>
    %276 = arith.cmpi slt, %275, %3 : vector<8x1xi32>
    %277 = vector.shape_cast %276 : vector<8x1xi1> to vector<8x1xi1>
    %278 = vector.broadcast %277 : vector<8x1xi1> to vector<8x128xi1>
    %279 = arith.select %278, %273, %234 : vector<8x128xi1>, vector<8x128xf32>
    %c0_79 = arith.constant 0 : index
    %c6 = arith.constant 6 : index
    %c0_80 = arith.constant 0 : index
    %280 = vector.load %arg3[%c0_79, %c6, %c0_80] : memref<8x8x32xbf16, #tpu.memory_space<vmem>>, vector<8x1x32xbf16>
    %281 = vector.shape_cast %280 : vector<8x1x32xbf16> to vector<8x32xbf16>
    %cst_81 = arith.constant dense<0.000000e+00> : vector<8x384xf32>
    %282 = tpu.matmul %281, %4, %cst_81 {dimension_numbers = #tpu.dot_dimension_numbers<[1], [0], [0], [1], [0, 0, 1, 1], [], []>} : vector<8x32xbf16>, vector<32x384xbf16>, vector<8x384xf32> -> vector<8x384xf32>
    %283 = vector.broadcast %6 : vector<1x384xf32> to vector<8x384xf32>
    %284 = arith.addf %282, %283 : vector<8x384xf32>
    %285 = arith.truncf %279 : vector<8x128xf32> to vector<8x128xbf16>
    %cst_82 = arith.constant dense<0.000000e+00> : vector<8x384xf32>
    %286 = tpu.matmul %285, %5, %cst_82 {dimension_numbers = #tpu.dot_dimension_numbers<[1], [0], [0], [1], [0, 0, 1, 1], [], []>} : vector<8x128xbf16>, vector<128x384xbf16>, vector<8x384xf32> -> vector<8x384xf32>
    %287 = vector.broadcast %7 : vector<1x384xf32> to vector<8x384xf32>
    %288 = arith.addf %286, %287 : vector<8x384xf32>
    %289 = vector.extract_strided_slice %284 {offsets = [0, 0], sizes = [8, 128], strides = [1, 1]} : vector<8x384xf32> to vector<8x128xf32>
    %290 = vector.extract_strided_slice %288 {offsets = [0, 0], sizes = [8, 128], strides = [1, 1]} : vector<8x384xf32> to vector<8x128xf32>
    %291 = arith.addf %289, %290 : vector<8x128xf32>
    %cst_83 = arith.constant 5.000000e-01 : f32
    %292 = vector.broadcast %cst_83 : f32 to vector<8x128xf32>
    %293 = arith.mulf %292, %291 : vector<8x128xf32>
    %294 = math.tanh %293 : vector<8x128xf32>
    %cst_84 = arith.constant 1.000000e+00 : f32
    %295 = vector.broadcast %cst_84 : f32 to vector<8x128xf32>
    %296 = arith.addf %294, %295 : vector<8x128xf32>
    %cst_85 = arith.constant 5.000000e-01 : f32
    %297 = vector.broadcast %cst_85 : f32 to vector<8x128xf32>
    %298 = arith.mulf %297, %296 : vector<8x128xf32>
    %299 = vector.extract_strided_slice %284 {offsets = [0, 128], sizes = [8, 128], strides = [1, 1]} : vector<8x384xf32> to vector<8x128xf32>
    %300 = vector.extract_strided_slice %288 {offsets = [0, 128], sizes = [8, 128], strides = [1, 1]} : vector<8x384xf32> to vector<8x128xf32>
    %301 = arith.addf %299, %300 : vector<8x128xf32>
    %cst_86 = arith.constant 5.000000e-01 : f32
    %302 = vector.broadcast %cst_86 : f32 to vector<8x128xf32>
    %303 = arith.mulf %302, %301 : vector<8x128xf32>
    %304 = math.tanh %303 : vector<8x128xf32>
    %cst_87 = arith.constant 1.000000e+00 : f32
    %305 = vector.broadcast %cst_87 : f32 to vector<8x128xf32>
    %306 = arith.addf %304, %305 : vector<8x128xf32>
    %cst_88 = arith.constant 5.000000e-01 : f32
    %307 = vector.broadcast %cst_88 : f32 to vector<8x128xf32>
    %308 = arith.mulf %307, %306 : vector<8x128xf32>
    %309 = vector.extract_strided_slice %284 {offsets = [0, 256], sizes = [8, 128], strides = [1, 1]} : vector<8x384xf32> to vector<8x128xf32>
    %310 = vector.extract_strided_slice %288 {offsets = [0, 256], sizes = [8, 128], strides = [1, 1]} : vector<8x384xf32> to vector<8x128xf32>
    %311 = arith.mulf %298, %310 : vector<8x128xf32>
    %312 = arith.addf %309, %311 : vector<8x128xf32>
    %313 = math.tanh %312 : vector<8x128xf32>
    %cst_89 = arith.constant 1.000000e+00 : f32
    %314 = vector.broadcast %cst_89 : f32 to vector<8x128xf32>
    %315 = arith.subf %314, %308 : vector<8x128xf32>
    %316 = arith.mulf %315, %313 : vector<8x128xf32>
    %317 = arith.mulf %308, %279 : vector<8x128xf32>
    %318 = arith.addf %316, %317 : vector<8x128xf32>
    %c6_i32 = arith.constant 6 : i32
    %319 = arith.addi %9, %c6_i32 : i32
    %320 = vector.broadcast %319 : i32 to vector<8x1xi32>
    %321 = arith.cmpi slt, %320, %3 : vector<8x1xi32>
    %322 = vector.shape_cast %321 : vector<8x1xi1> to vector<8x1xi1>
    %323 = vector.broadcast %322 : vector<8x1xi1> to vector<8x128xi1>
    %324 = arith.select %323, %318, %279 : vector<8x128xi1>, vector<8x128xf32>
    %c0_90 = arith.constant 0 : index
    %c7 = arith.constant 7 : index
    %c0_91 = arith.constant 0 : index
    %325 = vector.load %arg3[%c0_90, %c7, %c0_91] : memref<8x8x32xbf16, #tpu.memory_space<vmem>>, vector<8x1x32xbf16>
    %326 = vector.shape_cast %325 : vector<8x1x32xbf16> to vector<8x32xbf16>
    %cst_92 = arith.constant dense<0.000000e+00> : vector<8x384xf32>
    %327 = tpu.matmul %326, %4, %cst_92 {dimension_numbers = #tpu.dot_dimension_numbers<[1], [0], [0], [1], [0, 0, 1, 1], [], []>} : vector<8x32xbf16>, vector<32x384xbf16>, vector<8x384xf32> -> vector<8x384xf32>
    %328 = vector.broadcast %6 : vector<1x384xf32> to vector<8x384xf32>
    %329 = arith.addf %327, %328 : vector<8x384xf32>
    %330 = arith.truncf %324 : vector<8x128xf32> to vector<8x128xbf16>
    %cst_93 = arith.constant dense<0.000000e+00> : vector<8x384xf32>
    %331 = tpu.matmul %330, %5, %cst_93 {dimension_numbers = #tpu.dot_dimension_numbers<[1], [0], [0], [1], [0, 0, 1, 1], [], []>} : vector<8x128xbf16>, vector<128x384xbf16>, vector<8x384xf32> -> vector<8x384xf32>
    %332 = vector.broadcast %7 : vector<1x384xf32> to vector<8x384xf32>
    %333 = arith.addf %331, %332 : vector<8x384xf32>
    %334 = vector.extract_strided_slice %329 {offsets = [0, 0], sizes = [8, 128], strides = [1, 1]} : vector<8x384xf32> to vector<8x128xf32>
    %335 = vector.extract_strided_slice %333 {offsets = [0, 0], sizes = [8, 128], strides = [1, 1]} : vector<8x384xf32> to vector<8x128xf32>
    %336 = arith.addf %334, %335 : vector<8x128xf32>
    %cst_94 = arith.constant 5.000000e-01 : f32
    %337 = vector.broadcast %cst_94 : f32 to vector<8x128xf32>
    %338 = arith.mulf %337, %336 : vector<8x128xf32>
    %339 = math.tanh %338 : vector<8x128xf32>
    %cst_95 = arith.constant 1.000000e+00 : f32
    %340 = vector.broadcast %cst_95 : f32 to vector<8x128xf32>
    %341 = arith.addf %339, %340 : vector<8x128xf32>
    %cst_96 = arith.constant 5.000000e-01 : f32
    %342 = vector.broadcast %cst_96 : f32 to vector<8x128xf32>
    %343 = arith.mulf %342, %341 : vector<8x128xf32>
    %344 = vector.extract_strided_slice %329 {offsets = [0, 128], sizes = [8, 128], strides = [1, 1]} : vector<8x384xf32> to vector<8x128xf32>
    %345 = vector.extract_strided_slice %333 {offsets = [0, 128], sizes = [8, 128], strides = [1, 1]} : vector<8x384xf32> to vector<8x128xf32>
    %346 = arith.addf %344, %345 : vector<8x128xf32>
    %cst_97 = arith.constant 5.000000e-01 : f32
    %347 = vector.broadcast %cst_97 : f32 to vector<8x128xf32>
    %348 = arith.mulf %347, %346 : vector<8x128xf32>
    %349 = math.tanh %348 : vector<8x128xf32>
    %cst_98 = arith.constant 1.000000e+00 : f32
    %350 = vector.broadcast %cst_98 : f32 to vector<8x128xf32>
    %351 = arith.addf %349, %350 : vector<8x128xf32>
    %cst_99 = arith.constant 5.000000e-01 : f32
    %352 = vector.broadcast %cst_99 : f32 to vector<8x128xf32>
    %353 = arith.mulf %352, %351 : vector<8x128xf32>
    %354 = vector.extract_strided_slice %329 {offsets = [0, 256], sizes = [8, 128], strides = [1, 1]} : vector<8x384xf32> to vector<8x128xf32>
    %355 = vector.extract_strided_slice %333 {offsets = [0, 256], sizes = [8, 128], strides = [1, 1]} : vector<8x384xf32> to vector<8x128xf32>
    %356 = arith.mulf %343, %355 : vector<8x128xf32>
    %357 = arith.addf %354, %356 : vector<8x128xf32>
    %358 = math.tanh %357 : vector<8x128xf32>
    %cst_100 = arith.constant 1.000000e+00 : f32
    %359 = vector.broadcast %cst_100 : f32 to vector<8x128xf32>
    %360 = arith.subf %359, %353 : vector<8x128xf32>
    %361 = arith.mulf %360, %358 : vector<8x128xf32>
    %362 = arith.mulf %353, %324 : vector<8x128xf32>
    %363 = arith.addf %361, %362 : vector<8x128xf32>
    %c7_i32 = arith.constant 7 : i32
    %364 = arith.addi %9, %c7_i32 : i32
    %365 = vector.broadcast %364 : i32 to vector<8x1xi32>
    %366 = arith.cmpi slt, %365, %3 : vector<8x1xi32>
    %367 = vector.shape_cast %366 : vector<8x1xi1> to vector<8x1xi1>
    %368 = vector.broadcast %367 : vector<8x1xi1> to vector<8x128xi1>
    %369 = arith.select %368, %363, %324 : vector<8x128xi1>, vector<8x128xf32>
    %c0_101 = arith.constant 0 : index
    %c0_102 = arith.constant 0 : index
    %370 = vector.load %arg9[%c0_101, %c0_102] : memref<8x128xf32, #tpu.memory_space<vmem>>, vector<8x128xf32>
    tpu.vector_store %arg9[%c0_101, %c0_102], %369 {strides = array<i32>} : memref<8x128xf32, #tpu.memory_space<vmem>>, vector<8x128xf32>,
    %c0_i32_103 = arith.constant 0 : i32
    %371 = arith.cmpi eq, %arg1, %c0_i32_103 : i32
    %372 = arith.extui %371 : i1 to i32
    %c0_i32_104 = arith.constant 0 : i32
    %373 = arith.cmpi ne, %372, %c0_i32_104 : i32
    scf.if %373 {
      %c0_105 = arith.constant 0 : index
      %c0_106 = arith.constant 0 : index
      %374 = vector.load %arg8[%c0_105, %c0_106] : memref<8x128xf32, #tpu.memory_space<vmem>>, vector<8x128xf32>
      tpu.vector_store %arg8[%c0_105, %c0_106], %369 {strides = array<i32>} : memref<8x128xf32, #tpu.memory_space<vmem>>, vector<8x128xf32>,
    } else {
    }
    return
  }
  func.func @transform_0(%arg0: i32, %arg1: i32) -> (i32, i32) {
    %c0_i32 = arith.constant 0 : i32
    %c0_i32_0 = arith.constant 0 : i32
    return %arg0, %c0_i32 : i32, i32
  }
  func.func @transform_1(%arg0: i32, %arg1: i32) -> (i32, i32, i32) {
    %c0_i32 = arith.constant 0 : i32
    %c0_i32_0 = arith.constant 0 : i32
    return %arg0, %arg1, %c0_i32 : i32, i32, i32
  }
  func.func @transform_2(%arg0: i32, %arg1: i32) -> (i32, i32) {
    %c0_i32 = arith.constant 0 : i32
    %c0_i32_0 = arith.constant 0 : i32
    %c0_i32_1 = arith.constant 0 : i32
    return %c0_i32, %c0_i32_0 : i32, i32
  }
  func.func @transform_3(%arg0: i32, %arg1: i32) -> (i32, i32) {
    %c0_i32 = arith.constant 0 : i32
    %c0_i32_0 = arith.constant 0 : i32
    %c0_i32_1 = arith.constant 0 : i32
    return %c0_i32, %c0_i32_0 : i32, i32
  }
  func.func @transform_4(%arg0: i32, %arg1: i32) -> (i32, i32) {
    %c0_i32 = arith.constant 0 : i32
    %c0_i32_0 = arith.constant 0 : i32
    %c0_i32_1 = arith.constant 0 : i32
    return %c0_i32, %c0_i32_0 : i32, i32
  }
  func.func @transform_5(%arg0: i32, %arg1: i32) -> (i32, i32) {
    %c0_i32 = arith.constant 0 : i32
    %c0_i32_0 = arith.constant 0 : i32
    %c0_i32_1 = arith.constant 0 : i32
    return %c0_i32, %c0_i32_0 : i32, i32
  }
  func.func @transform_6(%arg0: i32, %arg1: i32) -> (i32, i32) {
    %c0_i32 = arith.constant 0 : i32
    %c0_i32_0 = arith.constant 0 : i32
    return %arg0, %c0_i32 : i32, i32
  }
}

</mosaic_0001>

<bundles_post_ra>
// kernel: tpu_custom_call.1
= control target key start
LH: loop header
LB: loop body
LE: loop exit
PB: predicated region body
PF: predicated region fallthrough
CT: control target
= control target key end

     0   :  { %11 = vsyncpa [#allocation4], 0  ;;  %s3853_s0 = inlined_call_operand.vmem [shape: s32[4,1], index: 0, kind: input, shape index: {}]   ;;  %s3854_s1 = inlined_call_operand.hbm [shape: bf16[4,8,32], index: 1, kind: input, shape index: {}]   ;;  %s3855_s2 = inlined_call_operand.hbm [shape: bf16[32,384], index: 2, kind: input, shape index: {}]   ;;  %s3856_s3 = inlined_call_operand.hbm [shape: bf16[128,384], index: 3, kind: input, shape index: {}]   ;;  %s3857_s4 = inlined_call_operand.vmem [shape: f32[1,384], index: 4, kind: input, shape index: {}]   ;;  %s3858_s5 = inlined_call_operand.vmem [shape: f32[1,384], index: 5, kind: input, shape index: {}]   ;;  %s3859_s6 = inlined_call_operand.hbm [shape: f32[4,128], index: 6, kind: output, shape index: {}]  }
   0x1   :  { %12 = vsyncpa [#allocation7], 0 }
   0x2   :  { %13 = vsyncpa [#allocation5], 0 }
   0x3   :  { %20 = vsyncadd [#allocation4], 256  ;;  %s2816_s21 = smov [#allocation6]  }
   0x4   :  { %s33_s22 = sshll.u32 %s2816_s21, 4  ;;  %s34_s22 = int_to_ptr.vmem [resolvable:$true] %s33_s22 }
   0x5   :  { %s2738_s23 = scalar_lea.vmem %s34_s22, 768  ;;  %p2743_p1 = scmp.lt.s32.totalorder %s34_s22, %s34_s22 }
   0x6   :  { %p2739_p0 = scmp.ne.s32.totalorder %s34_s22, %s2738_s23  ;;  %p2744_p2 = scmp.lt.s32.totalorder %s2738_s23, %s2738_s23 }
   0x8   :  { %p2745_p3 = por %p2744_p2, %p2743_p1 }
   0xa   :  { %p2746_p4 = pnand %p2745_p3, %p2739_p0 }
   0xc   :  { %2749 = shalt.err (!%p2746_p4)
}
   0xd   :  { %s2817_s24 = smov 192   ;;  %s2818_s25 = smov 12  }
   0xe   :  { %39 = dma.hbm_to_vmem [thread:$0]  %s3855_s2, 768, %s34_s22, [#allocation7], %s2817_s24, %s2817_s24, %s2818_s25  }
   0xf   :  { %s2819_s28 = smov [#allocation3]  }
  0x10   :  { %s21_s29 = sshll.u32 %s2819_s28, 4  ;;  %s22_s29 = int_to_ptr.vmem [resolvable:$true] %s21_s29 }
  0x11   :  { %s2758_s30 = scalar_lea.vmem %s22_s29, 256  ;;  %s2762_s7 = scalar_lea.vmem %s22_s29, 512 }
  0x12   :  { %p2759_p5 = scmp.ne.s32.totalorder %s22_s29, %s2758_s30  ;;  %p2763_p6 = scmp.lt.s32.totalorder %s22_s29, %s22_s29 }
  0x13   :  { %p2764_p7 = scmp.lt.s32.totalorder %s2762_s7, %s2758_s30 }
  0x15   :  { %p2765_p8 = por %p2764_p7, %p2763_p6 }
  0x17   :  { %p2766_p9 = pnand %p2765_p8, %p2759_p5 }
  0x19   :  { %2769 = shalt.err (!%p2766_p9)
}
  0x1a   :  { %s2820_s8 = smov 64   ;;  %s2821_s9 = smov 4  }
  0x1b   :  { %27 = dma.hbm_to_vmem [thread:$0]  %s3854_s1, 256, %s22_s29, [#allocation4], %s2820_s8, %s2820_s8, %s2821_s9  }
  0x1c   :  { %s2822_s2 = smov [#allocation8]  }
  0x1d   :  { %s45_s12 = sshll.u32 %s2822_s2, 4  ;;  %s46_s12 = int_to_ptr.vmem [resolvable:$true] %s45_s12 }
  0x1e   :  { %s2778_s13 = scalar_lea.vmem %s46_s12, 3072  ;;  %p2783_p11 = scmp.lt.s32.totalorder %s46_s12, %s46_s12 }
  0x1f   :  { %p2779_p10 = scmp.ne.s32.totalorder %s46_s12, %s2778_s13  ;;  %p2784_p12 = scmp.lt.s32.totalorder %s2778_s13, %s2778_s13 }
  0x21   :  { %p2785_p13 = por %p2784_p12, %p2783_p11 }
  0x23   :  { %p2786_p0 = pnand %p2785_p13, %p2779_p10 }
  0x25   :  { %2789 = shalt.err (!%p2786_p0)
}
  0x26   :  { %51 = dma.hbm_to_vmem [thread:$0]  %s3856_s3, 3072, %s46_s12, [#allocation7], %s2817_s24, %s2817_s24, %s2818_s25  }
  0x27   :  { %2810 = dma.done.wait [#allocation4], 512  }
  0x28   :  { %2811 = vsyncadd [#allocation4], 4294966784 }
  0x29   :  { %2812 = dma.done.wait [#allocation7], 3840  }
  0x2a   :  { %2813 = vsyncadd [#allocation7], 4294963456  ;;  %v3862_v0 = vmov 0   ;;  %v3864_v1 = vmov 0.0   ;;  %vm2825_vm0 = vmmov 0   ;;  %vm173_vm1 = vcmask 1041409  }
  0x2b   :  { %262 = vmatprep.mubr.bf16.mxu0 %v3862_v0  ;;  %2578 = vset.pattern.permute.xlu0 %v3862_v0  ;;  %v2887_v2 = vld [vmem:[#allocation6 + $0x1c] ss:$12 sps:$4 sm:$0xff]   ;;  %v2889_v3 = vld [vmem:[#allocation6 + $0x18] ss:$12 sps:$4 sm:$0xff]   ;;  %v2894_v5 = vld [vmem:[#allocation6] ss:$12 sps:$4 sm:$0xff]  }
  0x2c   :  { %2579 = vset.pattern.permute.xlu1 %v3862_v0  ;;  %2342 = vmatprep.subr.bf16.mxu1 %v3864_v1  ;;  %v2892_v4 = vld [vmem:[#allocation6 + $0x4] ss:$12 sps:$4 sm:$0xff]   ;;  %v2897_v6 = vld [vmem:[#allocation8 + $0xac] ss:$12 sps:$4 sm:$0xff]   ;;  %vm176_vm2 = vcmask 1042434   ;;  %vm179_vm3 = vcmask 1043459  }
  0x2d   :  { %2346 = vmatprep.mubr.msk.bf16.mxu1 %vm2825_vm0, %v3864_v1  ;;  %242 = vmatprep.subr.bf16.mxu0 %v2887_v2  ;;  %v2900_v7 = vld [vmem:[#allocation3] ss:$0 sps:$4 sm:$0x11]   ;;  %v2903_v8 = vld [vmem:[#allocation3 + $0x4] ss:$0 sps:$4 sm:$0x11]  }
  0x2e   :  { %243 = vmatpush1.bf16.msra.mxu0 %v2889_v3  ;;  %v2905_v9 = vld [vmem:[#allocation3 + $0x8] ss:$0 sps:$4 sm:$0x11]   ;;  %v2908_v10 = vld [vmem:[#allocation3 + $0xc] ss:$0 sps:$4 sm:$0x11]   ;;  %v164_v14 = vunpack.c.l.b16 %v2900_v7  ;;  %v165_v15 = vunpack.c.l.b16 %v2903_v8 }
  0x2f   :  { %244 = vmatprep.subr.bf16.mxu0 %v2892_v4  ;;  %v2910_v11 = vld [vmem:[#allocation3 + $0x10] ss:$0 sps:$4 sm:$0x11]   ;;  %v2912_v12 = vld [vmem:[#allocation3 + $0x14] ss:$0 sps:$4 sm:$0x11]   ;;  %v166_v16 = vunpack.c.l.b16 %v2905_v9  ;;  %v167_v18 = vunpack.c.l.b16 %v2908_v10 }
  0x30   :  { %v2914_v13 = vld [vmem:[#allocation3 + $0x18] ss:$0 sps:$4 sm:$0x11]   ;;  %v2919_v17 = vld [vmem:[#allocation3 + $0x1c] ss:$0 sps:$4 sm:$0x11]   ;;  %v168_v19 = vunpack.c.l.b16 %v2910_v11  ;;  %v169_v20 = vunpack.c.l.b16 %v2912_v12 }
  0x31   :  { %v170_v21 = vunpack.c.l.b16 %v2914_v13  ;;  %v172_v22 = vrot.slane %v165_v15, 7  ;;  %v175_v23 = vrot.slane %v166_v16, 6  ;;  %v171_v24 = vunpack.c.l.b16 %v2919_v17  ;;  %v2945_v33 = vld [vmem:[#allocation6 + $0x20] ss:$12 sps:$4 sm:$0xff]   ;;  %v2950_v36 = vld [vmem:[#allocation6 + $0x8] ss:$12 sps:$4 sm:$0xff]  }
  0x32   :  { %245 = vmatpush1.bf16.msra.mxu0 %v2894_v5  ;;  %v178_v25 = vrot.slane %v167_v18, 5  ;;  %v181_v26 = vrot.slane %v168_v19, 4  ;;  %vm182_vm4 = vcmask 1044484   ;;  %v184_v28 = vrot.slane %v169_v20, 3  ;;  %2343 = vmatpush3.bf16.msra.mxu1 %v2945_v33  ;;  %v2955_v39 = vld [vmem:[#allocation8 + $0xa8] ss:$12 sps:$4 sm:$0xff]  }
  0x33   :  { %456 = vmatprep.subr.bf16.mxu0 %v2897_v6  ;;  %v174_v27 = vsel %vm173_vm1, %v172_v22, %v164_v14  ;;  %vm185_vm5 = vcmask 1045509   ;;  %v187_v30 = vrot.slane %v170_v21, 2  ;;  %vm188_vm6 = vcmask 1046534   ;;  %2344 = vmatprep.subr.bf16.mxu1 %v3864_v1  ;;  %v2957_v41 = vld [vmem:[#allocation8 + $0x94] ss:$12 sps:$4 sm:$0xff]  }
  0x34   :  { %v177_v29 = vsel %vm176_vm2, %v175_v23, %v174_v27  ;;  %v190_v32 = vrot.slane %v171_v24, 1  ;;  %vm191_vm7 = vcmask 1047559   ;;  %vm226_vm8 = vcmask 261120   ;;  %v2960_v42 = vld [vmem:[#allocation8 + $0xb0] ss:$12 sps:$4 sm:$0xff]  }
  0x35   :  { %v180_v31 = vsel %vm179_vm3, %v178_v25, %v177_v29  ;;  %v2965_v43 = vld [vmem:[#allocation8 + $0x90] ss:$12 sps:$4 sm:$0xff]   ;;  %v2973_v45 = vld [vmem:[#allocation8 + $0x98] ss:$12 sps:$4 sm:$0xff]   ;;  %v2985_v48 = vld [vmem:[#allocation8 + $0x80] ss:$12 sps:$4 sm:$0xff]  }
  0x36   :  { %v183_v34 = vsel %vm182_vm4, %v181_v26, %v180_v31  ;;  %2345 = vmatpush3.bf16.msra.mxu1 %v2950_v36  ;;  %v2969_v44 = vld [vmem:[#allocation8 + $0x7c] ss:$12 sps:$4 sm:$0xff]   ;;  %v2979_v46 = vld [vmem:[#allocation8 + $0x78] ss:$12 sps:$4 sm:$0xff]   ;;  %v2987_v49 = vld [vmem:[#allocation8 + $0x60] ss:$12 sps:$4 sm:$0xff]  }
  0x37   :  { %v186_v35 = vsel %vm185_vm5, %v184_v28, %v183_v34  ;;  %2350 = vmatprep.subr.bf16.mxu1 %v3864_v1  ;;  %v2982_v47 = vld [vmem:[#allocation8 + $0x64] ss:$12 sps:$4 sm:$0xff]   ;;  %v2991_v50 = vld [vmem:[#allocation8 + $0x4c] ss:$12 sps:$4 sm:$0xff]   ;;  %v2993_v51 = vld [vmem:[#allocation8 + $0x68] ss:$12 sps:$4 sm:$0xff]  }
  0x38   :  { %v189_v37 = vsel %vm188_vm6, %v187_v30, %v186_v35  ;;  %v2998_v52 = vld [vmem:[%s3853_s0] sm:$0xff]  ;;  %v3021_v60 = vld [vmem:[#allocation8 + $0x1c] ss:$12 sps:$4 sm:$0xff]   ;;  %v3027_v61 = vld [vmem:[#allocation8 + $0x38] ss:$12 sps:$4 sm:$0xff]   ;;  %v2826_v27 = vmov 0.0|0.0  }
  0x39   :  { %v192_v38 = vsel %vm191_vm7, %v190_v32, %v189_v37  ;;  %vm2194_vm9 = vcmp.gt.s32.totalorder %v2998_v52, 0  ;;  %vm2197_vm10 = vcmp.gt.s32.totalorder %v2998_v52, 1  ;;  %vm2222_vm11 = vcmp.gt.s32.totalorder %v2998_v52, 4  ;;  %v3004_v53 = vld [vmem:[#allocation8 + $0x48] ss:$12 sps:$4 sm:$0xff]  }
  0x3a   :  { %v193_v40 = vpack.c.b16 %v192_v38, %v192_v38  ;;  %v556_v54 = vsel %vm2194_vm9, 1, %v3862_v0  ;;  %v763_v55 = vsel %vm2197_vm10, 1, %v3862_v0  ;;  %v1464_v56 = vsel %vm2222_vm11, 1, %v3862_v0  ;;  %v3011_v57 = vld [vmem:[#allocation8 + $0x34] ss:$12 sps:$4 sm:$0xff]  }
  0x3b   :  { %vm2236_vm12 = vcmp.gt.s32.totalorder %v2998_v52, 6  ;;  %558 = vperm.xlu0 %2578, %v556_v54   ;;  %v3015_v58 = vld [vmem:[#allocation8 + $0x50] ss:$12 sps:$4 sm:$0xff]   ;;  %v3031_v62 = vld [vmem:[#allocation8 + $0x18] ss:$12 sps:$4 sm:$0xff]   ;;  %v562_v28 = vrot.slane %v164_v14, 1  ;;  %v125_v37 = vlaneseq }
  0x3c   :  { %2168 = vmatmul.mubr.msk.bf16.vlgmr.msra.gmra.mxu0 %vm226_vm8, %v193_v40  ;;  %2347 = vmatmul.mubr.msk.bf16.vlgmr.msra.gmra.mxu1 %vm226_vm8, %v193_v40  ;;  %v3018_v59 = vld [vmem:[#allocation8 + $0x30] ss:$12 sps:$4 sm:$0xff]   ;;  %v1918_v63 = vsel %vm2236_vm12, 1, %v3862_v0  ;;  %v3040_v23 = vld [vmem:[#allocation8 + $0x20] ss:$12 sps:$4 sm:$0xff]   ;;  %v564_v29 = vrot.slane %v166_v16, 7 }
  0x3d   :  { %457 = vmatpush1.bf16.msra.mxu0 %v2955_v39  ;;  %488 = vmatprep.mubr.bf16.mxu0 %v3862_v0  ;;  %v3037_v22 = vld [vmem:[#allocation8 + $0x4] ss:$12 sps:$4 sm:$0xff]   ;;  %v3044_v25 = vld [vmem:[#allocation8] ss:$12 sps:$4 sm:$0xff]   ;;  %v3048_v26 = vld [vmem:[#allocation8 + $0x8] ss:$12 sps:$4 sm:$0xff]   ;;  %v563_v34 = vsel %vm173_vm1, %v165_v15, %v562_v28 }
  0x3e   :  { %458 = vmatprep.subr.bf16.mxu0 %v2957_v41  ;;  %2351 = vmatpush3.bf16.msra.mxu1 %v2960_v42  ;;  %3891 = vst [vmem:[#allocation13_spill] sm:$0xff] %v3044_v25  ;;  %3892 = vst [vmem:[#allocation14_spill] sm:$0xff] %v3048_v26  ;;  %v566_v30 = vrot.slane %v167_v18, 6  ;;  %v568_v31 = vrot.slane %v168_v19, 5  ;;  %v570_v32 = vrot.slane %v169_v20, 4  ;;  %v572_v7 = vrot.slane %v170_v21, 3 }
  0x3f   :  { %2366 = vmatprep.mubr.msk.bf16.mxu1 %vm2825_vm0, %v3864_v1  ;;  %2352 = vmatprep.subr.bf16.mxu1 %v3864_v1  ;;  %v565_v14 = vsel %vm176_vm2, %v564_v29, %v563_v34  ;;  %v574_v9 = vrot.slane %v171_v24, 2  ;;  %v126_v38 = vshrl.u32 %v125_v37, 7  ;;  %v112_v54 = vld [vmem:[%s3857_s4] sm:$0x7]  ;;  %vm2208_vm15 = vcmp.gt.s32.totalorder %v2998_v52, 2 }
  0x40   :  { %765 = vperm.xlu0 %2578, %v763_v55   ;;  %v567_v10 = vsel %vm179_vm3, %v566_v30, %v565_v14  ;;  %v113_v55 = vld [vmem:[%s3858_s5] sm:$0x7]  ;;  %vm2211_vm9 = vcmp.gt.s32.totalorder %v2998_v52, 3  ;;  %vm2225_vm10 = vcmp.gt.s32.totalorder %v2998_v52, 5  ;;  %vm2239_vm11 = vcmp.gt.s32.totalorder %v2998_v52, 7 }
  0x41   :  { %459 = vmatpush1.bf16.msra.mxu0 %v2965_v43  ;;  %v569_v11 = vsel %vm182_vm4, %v568_v31, %v567_v10  ;;  %v127_v40 = vsub.s32 0, %v126_v38 }
  0x42   :  { %460 = vmatprep.subr.bf16.mxu0 %v2969_v44  ;;  %2353 = vmatpush3.bf16.msra.mxu1 %v2973_v45  ;;  %v571_v16 = vsel %vm185_vm5, %v570_v32, %v569_v11 }
  0x43   :  { %2354 = vmatprep.subr.bf16.mxu1 %v3864_v1  ;;  %v573_v12 = vsel %vm188_vm6, %v572_v7, %v571_v16 }
  0x44   :  { %1466 = vperm.xlu0 %2578, %v1464_v56   ;;  %v575_v8 = vsel %vm191_vm7, %v574_v9, %v573_v12  ;;  %v3132_v56 = vrot.slane %v112_v54, %v127_v40 }
  0x45   :  { %461 = vmatpush1.bf16.msra.mxu0 %v2979_v46  ;;  %v576_v18 = vpack.c.b16 %v575_v8, %v575_v8 }
  0x46   :  { %462 = vmatprep.subr.bf16.mxu0 %v2982_v47  ;;  %2355 = vmatpush3.bf16.msra.mxu1 %v2985_v48  ;;  %3893 = vst [vmem:[#allocation15_spill] sm:$0xff] %v3132_v56 }
  0x47   :  { %2356 = vmatprep.subr.bf16.mxu1 %v3864_v1 }
  0x48   :  { %1920 = vperm.xlu0 %2578, %v1918_v63   ;;  %v3134_v63 = vrot.slane %v113_v55, %v127_v40 }
  0x49   :  { %463 = vmatpush1.bf16.msra.mxu0 %v2987_v49 }
  0x4a   :  { %464 = vmatprep.subr.bf16.mxu0 %v2991_v50  ;;  %2357 = vmatpush3.bf16.msra.mxu1 %v2993_v51  ;;  %3894 = vst [vmem:[#allocation16_spill] sm:$0xff] %v3134_v63 }
  0x4b   :  { %2358 = vmatprep.subr.bf16.mxu1 %v3864_v1 }
  0x4d   :  { %465 = vmatpush1.bf16.msra.mxu0 %v3004_v53 }
  0x4e   :  { %466 = vmatprep.subr.bf16.mxu0 %v3011_v57  ;;  %2359 = vmatpush3.bf16.msra.mxu1 %v3015_v58 }
  0x4f   :  { %2360 = vmatprep.subr.bf16.mxu1 %v3864_v1 }
  0x51   :  { %467 = vmatpush1.bf16.msra.mxu0 %v3018_v59 }
  0x52   :  { %468 = vmatprep.subr.bf16.mxu0 %v3021_v60  ;;  %2361 = vmatpush3.bf16.msra.mxu1 %v3027_v61 }
  0x53   :  { %2362 = vmatprep.subr.bf16.mxu1 %v3864_v1 }
  0x55   :  { %469 = vmatpush1.bf16.msra.mxu0 %v3031_v62 }
  0x56   :  { %470 = vmatprep.subr.bf16.mxu0 %v3037_v22  ;;  %2363 = vmatpush3.bf16.msra.mxu1 %v3040_v23 }
  0x57   :  { %2364 = vmatprep.subr.bf16.mxu1 %v3864_v1 }
  0x59   :  { %471 = vmatpush1.bf16.msra.mxu0 %v3044_v25 }
  0x5a   :  { %592 = vmatprep.subr.bf16.mxu0 %v2887_v2  ;;  %2365 = vmatpush3.bf16.msra.mxu1 %v3048_v26 }
  0x5b   :  { %2370 = vmatprep.subr.bf16.mxu1 %v3864_v1 }
  0x5c   :  { %489 = vmatmul.mubr.bf16.vlgmr.msra.gmra.mxu0 %v2826_v27 }
  0x5d   :  { %593 = vmatpush1.bf16.msra.mxu0 %v2889_v3  ;;  %612 = vmatprep.mubr.bf16.mxu0 %v3862_v0 }
  0x5e   :  { %2367 = vmatmul.mubr.bf16.vlgmr.msra.gmra.mxu1 %v2826_v27  ;;  %594 = vmatprep.subr.bf16.mxu0 %v2892_v4  ;;  %v131_v27 = vsub.s32 1, %v126_v38 }
  0x5f   :  { %2371 = vmatpush3.bf16.msra.mxu1 %v2945_v33  ;;  %2374 = vmatprep.mubr.msk.bf16.mxu1 %vm2825_vm0, %v3864_v1 }
  0x60   :  { %2372 = vmatprep.subr.bf16.mxu1 %v3864_v1  ;;  %v3138_v31 = vrot.slane %v113_v55, %v131_v27  ;;  %v3140_v7 = vrot.slane %v112_v54, %v131_v27 }
  0x61   :  { %595 = vmatpush1.bf16.msra.mxu0 %v2894_v5 }
  0x62   :  { %662 = vmatprep.subr.bf16.mxu0 %v2897_v6 }
  0x63   :  { %2373 = vmatpush3.bf16.msra.mxu1 %v2950_v36 }
  0x64   :  { %2378 = vmatprep.subr.bf16.mxu1 %v3864_v1  ;;  %2195 = vmatmul.mubr.msk.bf16.vlgmr.msra.gmra.mxu0 %vm226_vm8, %v576_v18 }
  0x65   :  { %663 = vmatpush1.bf16.msra.mxu0 %v2955_v39  ;;  %694 = vmatprep.mubr.bf16.mxu0 %v3862_v0 }
  0x66   :  { %2375 = vmatmul.mubr.msk.bf16.vlgmr.msra.gmra.mxu1 %vm226_vm8, %v576_v18  ;;  %664 = vmatprep.subr.bf16.mxu0 %v2957_v41 }
  0x67   :  { %2379 = vmatpush3.bf16.msra.mxu1 %v2960_v42  ;;  %2394 = vmatprep.mubr.msk.bf16.mxu1 %vm2825_vm0, %v3864_v1 }
  0x68   :  { %2380 = vmatprep.subr.bf16.mxu1 %v3864_v1 }
  0x69   :  { %665 = vmatpush1.bf16.msra.mxu0 %v2965_v43 }
  0x6a   :  { %666 = vmatprep.subr.bf16.mxu0 %v2969_v44 }
  0x6b   :  { %2381 = vmatpush3.bf16.msra.mxu1 %v2973_v45 }
  0x6c   :  { %2382 = vmatprep.subr.bf16.mxu1 %v3864_v1 }
  0x6d   :  { %667 = vmatpush1.bf16.msra.mxu0 %v2979_v46 }
  0x6e   :  { %668 = vmatprep.subr.bf16.mxu0 %v2982_v47 }
  0x6f   :  { %2383 = vmatpush3.bf16.msra.mxu1 %v2985_v48 }
  0x70   :  { %2384 = vmatprep.subr.bf16.mxu1 %v3864_v1 }
  0x71   :  { %669 = vmatpush1.bf16.msra.mxu0 %v2987_v49 }
  0x72   :  { %670 = vmatprep.subr.bf16.mxu0 %v2991_v50 }
  0x73   :  { %2385 = vmatpush3.bf16.msra.mxu1 %v2993_v51 }
  0x74   :  { %2386 = vmatprep.subr.bf16.mxu1 %v3864_v1 }
  0x75   :  { %671 = vmatpush1.bf16.msra.mxu0 %v3004_v53 }
  0x76   :  { %672 = vmatprep.subr.bf16.mxu0 %v3011_v57 }
  0x77   :  { %2387 = vmatpush3.bf16.msra.mxu1 %v3015_v58 }
  0x78   :  { %2388 = vmatprep.subr.bf16.mxu1 %v3864_v1 }
  0x79   :  { %673 = vmatpush1.bf16.msra.mxu0 %v3018_v59 }
  0x7a   :  { %674 = vmatprep.subr.bf16.mxu0 %v3021_v60 }
  0x7b   :  { %2389 = vmatpush3.bf16.msra.mxu1 %v3027_v61 }
  0x7c   :  { %2390 = vmatprep.subr.bf16.mxu1 %v3864_v1 }
  0x7d   :  { %675 = vmatpush1.bf16.msra.mxu0 %v3031_v62 }
  0x7e   :  { %676 = vmatprep.subr.bf16.mxu0 %v3037_v22 }
  0x7f   :  { %2391 = vmatpush3.bf16.msra.mxu1 %v3040_v23 }
  0x80   :  { %2392 = vmatprep.subr.bf16.mxu1 %v3864_v1 }
  0x81   :  { %677 = vmatpush1.bf16.msra.mxu0 %v3044_v25 }
  0x82   :  { %839 = vmatprep.subr.bf16.mxu0 %v2887_v2 }
  0x83   :  { %2393 = vmatpush3.bf16.msra.mxu1 %v3048_v26 }
  0x84   :  { %2398 = vmatprep.subr.bf16.mxu1 %v3864_v1 }
  0xfc   :  { %v264_v13 = vpop.f32.mrf.mxu0  ;;  %v305_v17 = vpop.f32.mrf.mxu1 }
  0xfd   :  { %v265_v29 = vadd.f32 %v264_v13, %v3132_v56 }
  0xfe   :  { %v266_v15 = vpop.f32.mrf.mxu0  ;;  %v2348_v20 = vpop.f32.mrf.mxu1 }
  0xff   :  { %v267_v18 = vadd.f32 %v266_v15, %v3140_v7 }
 0x100   :  { %v268_v19 = vpop.f32.mrf.mxu0  ;;  %v308_v24 = vpop.f32.mrf.mxu1 }
 0x102   :  { %v269_v21 = vpop.f32.mrf.mxu0  ;;  %v2349_v35 = vpop.f32.mrf.mxu1 }
 0x103   :  { %v135_v21 = vsub.s32 2, %v126_v38 }
 0x105   :  { %v3144_v24 = vrot.slane %v113_v55, %v135_v21  ;;  %v3146_v37 = vrot.slane %v112_v54, %v135_v21 }
 0x11c   :  { %v490_v28 = vpop.f32.mrf.mxu0 }
 0x11d   :  { %v491_v30 = vadd.f32 %v490_v28, %v3134_v63 }
 0x11e   :  { %v492_v32 = vpop.f32.mrf.mxu0  ;;  %v531_v34 = vpop.f32.mrf.mxu1 }
 0x11f   :  { %v537_v14 = vadd.f32 %v491_v30, %v265_v29  ;;  %v493_v16 = vadd.f32 %v492_v32, %v3138_v31  ;;  %v532_v40 = vadd.f32 %v531_v34, %v3144_v24  ;;  %v306_v29 = vadd.f32 %v305_v17, %v3146_v37 }
 0x120   :  { %v494_v9 = vpop.f32.mrf.mxu0  ;;  %v2368_v10 = vpop.f32.mrf.mxu1 }
 0x121   :  { %v538_v11 = vmul.f32 0.5, %v537_v14  ;;  %v542_v19 = vadd.f32 %v493_v16, %v267_v18 }
 0x122   :  { %v495_v12 = vpop.f32.mrf.mxu0  ;;  %v534_v8 = vpop.f32.mrf.mxu1 }
 0x123   :  { %2652 = vtanh.f32 %v538_v11  ;;  %v543_v20 = vmul.f32 0.5, %v542_v19  ;;  %v3150_v11 = vpop.permute.xlu0 %558 }
 0x124   :  { %v2369_v13 = vpop.f32.mrf.mxu1  ;;  %vm560_vm13 = vcmp.eq.s32.totalorder %v3150_v11, 1  ;;  %v3171_v34 = vpop.f32.mrf.mxu0 }
 0x125   :  { %2654 = vtanh.f32 %v543_v20  ;;  %vm2240_vm14 = vmpackc.low %vm560_vm13, %vm560_vm13 }
 0x126   :  { %v3173_v12 = vpop.f32.mrf.mxu1  ;;  %v3175_v8 = vpop.f32.mrf.mxu0 }
 0x128   :  { %v2376_v18 = vpop.f32.mrf.mxu1  ;;  %v618_v13 = vpop.f32.mrf.mxu0 }
 0x12a   :  { %v658_v19 = vpop.f32.mrf.mxu1  ;;  %v619_v20 = vpop.f32.mrf.mxu0 }
 0x12c   :  { %v2377_v21 = vpop.f32.mrf.mxu1 }
 0x130   :  { %v2653_v35 = vpop.eup %2652 }
 0x131   :  { %v540_v27 = vadd.f32 1.0, %v2653_v35  ;;  %v3177_v35 = vld [vmem:[#allocation3] ss:$0 sps:$4 sm:$0x22]  }
 0x132   :  { %v2655_v15 = vpop.eup %2654 }
 0x133   :  { %v541_v28 = vmul.f32 0.5, %v540_v27  ;;  %v545_v14 = vadd.f32 1.0, %v2655_v15  ;;  %v3181_v27 = vld [vmem:[#allocation3 + $0xc] ss:$0 sps:$4 sm:$0x22]  }
 0x134   :  { %3895 = vst [vmem:[#allocation17_spill] sm:$0xff] %v3181_v27  ;;  %v3189_v15 = vld [vmem:[#allocation3 + $0x14] ss:$0 sps:$4 sm:$0x22]  }
 0x135   :  { %v547_v30 = vmul.f32 %v541_v28, %v532_v40  ;;  %v546_v9 = vmul.f32 0.5, %v545_v14  ;;  %v3179_v40 = vld [vmem:[#allocation3 + $0x4] ss:$0 sps:$4 sm:$0x22]   ;;  %v3861_v28 = vunpack.c.l.b16 %v3177_v35  ;;  %v3866_v14 = vunpack.c.l.b16 %v3181_v27 }
 0x136   :  { %v3872_v18 = vunpack.c.l.b16 %v3189_v15 }
 0x137   :  { %v548_v32 = vadd.f32 %v547_v30, %v306_v29  ;;  %v550_v10 = vsub.f32 1.0, %v546_v9  ;;  %v552_v16 = vmul.f32 0.0, %v546_v9  ;;  %v3860_v29 = vunpack.c.l.b16 %v3179_v40  ;;  %v3185_v30 = vld [vmem:[#allocation3 + $0x8] ss:$0 sps:$4 sm:$0x22]  }
 0x138   :  { %v809_v9 = vrot.slane %v3861_v28, 2  ;;  %v813_v19 = vrot.slane %v3866_v14, 7 }
 0x139   :  { %2656 = vtanh.f32 %v548_v32  ;;  %v3187_v32 = vld [vmem:[#allocation3 + $0x10] ss:$0 sps:$4 sm:$0x22]  }
 0x146   :  { %v2657_v38 = vpop.eup %2656 }
 0x147   :  { %v551_v55 = vmul.f32 %v2657_v38, %v550_v10  ;;  %v810_v10 = vrot.slane %v3860_v29, 1  ;;  %v3196_v38 = vld [vmem:[#allocation3 + $0x18] ss:$0 sps:$4 sm:$0x22]  }
 0x148   :  { %v3871_v20 = vunpack.c.l.b16 %v3196_v38 }
 0x149   :  { %v3153_v54 = vadd.f32 %v552_v16, %v551_v55  ;;  %v3867_v55 = vunpack.c.l.b16 %v3185_v30  ;;  %v3868_v16 = vunpack.c.l.b16 %v3187_v32  ;;  %v811_v13 = vsel %vm173_vm1, %v810_v10, %v809_v9 }
 0x14a   :  { %v819_v10 = vrot.slane %v3871_v20, 4 }
 0x14b   :  { %v2241_v17 = vpack.c.bf16 %v3153_v54, %v3153_v54  ;;  %v812_v21 = vsel %vm176_vm2, %v3867_v55, %v811_v13  ;;  %v815_v29 = vrot.slane %v3868_v16, 6 }
 0x14d   :  { %2242 = vmatmul.mubr.msk.bf16.vlgmr.msra.gmra.mxu0 %vm2240_vm14, %v2241_v17  ;;  %2395 = vmatmul.mubr.msk.bf16.vlgmr.msra.gmra.mxu1 %vm2240_vm14, %v2241_v17  ;;  %v3200_v17 = vld [vmem:[#allocation3 + $0x1c] ss:$0 sps:$4 sm:$0x22]  }
 0x14e   :  { %840 = vmatpush1.bf16.msra.mxu0 %v2889_v3  ;;  %2399 = vmatpush3.bf16.msra.mxu1 %v2945_v33  ;;  %v3870_v28 = vunpack.c.l.b16 %v3200_v17 }
 0x14f   :  { %841 = vmatprep.subr.bf16.mxu0 %v2892_v4  ;;  %859 = vmatprep.mubr.bf16.mxu0 %v3862_v0  ;;  %v814_v0 = vsel %vm179_vm3, %v813_v19, %v812_v21  ;;  %v615_v19 = vadd.f32 %v3171_v34, %v3132_v56 }
 0x150   :  { %2400 = vmatprep.subr.bf16.mxu1 %v3864_v1  ;;  %2402 = vmatprep.mubr.msk.bf16.mxu1 %vm2825_vm0, %v3864_v1  ;;  %v816_v9 = vsel %vm182_vm4, %v815_v29, %v814_v0  ;;  %v821_v13 = vrot.slane %v3870_v28, 3  ;;  %v3896_v0 = vmov 0.0  }
 0x152   :  { %842 = vmatpush1.bf16.msra.mxu0 %v2894_v5  ;;  %2401 = vmatpush3.bf16.msra.mxu1 %v2950_v36 }
 0x153   :  { %909 = vmatprep.subr.bf16.mxu0 %v2897_v6  ;;  %2406 = vmatprep.subr.bf16.mxu1 %v3864_v1  ;;  %v817_v1 = vrot.slane %v3872_v18, 5 }
 0x155   :  { %v818_v14 = vsel %vm185_vm5, %v817_v1, %v816_v9  ;;  %v3897_v1 = vmov 0  }
 0x156   :  { %v820_v55 = vsel %vm188_vm6, %v819_v10, %v818_v14  ;;  %v1217_v29 = vsel %vm2211_vm9, 1, %v3897_v1  ;;  %v1671_v14 = vsel %vm2225_vm10, 1, %v3897_v1 }
 0x157   :  { %v822_v16 = vsel %vm191_vm7, %v821_v13, %v820_v55  ;;  %v617_v13 = vadd.f32 %v3175_v8, %v3140_v7  ;;  %v656_v8 = vadd.f32 %v3173_v12, %v3146_v37 }
 0x158   :  { %v823_v27 = vpack.c.b16 %v822_v16, %v822_v16 }
 0x15a   :  { %2206 = vmatmul.mubr.msk.bf16.vlgmr.msra.gmra.mxu0 %vm226_vm8, %v823_v27  ;;  %2403 = vmatmul.mubr.msk.bf16.vlgmr.msra.gmra.mxu1 %vm226_vm8, %v823_v27  ;;  %v1010_v27 = vsel %vm2208_vm15, 1, %v3897_v1 }
 0x15b   :  { %910 = vmatpush1.bf16.msra.mxu0 %v2955_v39  ;;  %2407 = vmatpush3.bf16.msra.mxu1 %v2960_v42 }
 0x15c   :  { %911 = vmatprep.subr.bf16.mxu0 %v2957_v41  ;;  %2408 = vmatprep.subr.bf16.mxu1 %v3896_v0 }
 0x15d   :  { %941 = vmatprep.mubr.bf16.mxu0 %v3897_v1  ;;  %2422 = vmatprep.mubr.msk.bf16.mxu1 %vm2825_vm0, %v3896_v0 }
 0x15e   :  { %1012 = vperm.xlu1 %2579, %v1010_v27  }
 0x15f   :  { %912 = vmatpush1.bf16.msra.mxu0 %v2965_v43  ;;  %2409 = vmatpush3.bf16.msra.mxu1 %v2973_v45 }
 0x160   :  { %913 = vmatprep.subr.bf16.mxu0 %v2969_v44  ;;  %2410 = vmatprep.subr.bf16.mxu1 %v3896_v0 }
 0x162   :  { %1219 = vperm.xlu1 %2579, %v1217_v29  }
 0x163   :  { %914 = vmatpush1.bf16.msra.mxu0 %v2979_v46  ;;  %2411 = vmatpush3.bf16.msra.mxu1 %v2985_v48 }
 0x164   :  { %915 = vmatprep.subr.bf16.mxu0 %v2982_v47  ;;  %2412 = vmatprep.subr.bf16.mxu1 %v3896_v0 }
 0x166   :  { %1673 = vperm.xlu1 %2579, %v1671_v14  }
 0x167   :  { %916 = vmatpush1.bf16.msra.mxu0 %v2987_v49  ;;  %2413 = vmatpush3.bf16.msra.mxu1 %v2993_v51 }
 0x168   :  { %917 = vmatprep.subr.bf16.mxu0 %v2991_v50  ;;  %2414 = vmatprep.subr.bf16.mxu1 %v3896_v0 }
 0x16b   :  { %918 = vmatpush1.bf16.msra.mxu0 %v3004_v53  ;;  %2415 = vmatpush3.bf16.msra.mxu1 %v3015_v58 }
 0x16c   :  { %919 = vmatprep.subr.bf16.mxu0 %v3011_v57  ;;  %2416 = vmatprep.subr.bf16.mxu1 %v3896_v0 }
 0x16f   :  { %920 = vmatpush1.bf16.msra.mxu0 %v3018_v59  ;;  %2417 = vmatpush3.bf16.msra.mxu1 %v3027_v61 }
 0x170   :  { %921 = vmatprep.subr.bf16.mxu0 %v3021_v60  ;;  %2418 = vmatprep.subr.bf16.mxu1 %v3896_v0 }
 0x173   :  { %922 = vmatpush1.bf16.msra.mxu0 %v3031_v62  ;;  %2419 = vmatpush3.bf16.msra.mxu1 %v3040_v23 }
 0x174   :  { %923 = vmatprep.subr.bf16.mxu0 %v3037_v22  ;;  %2420 = vmatprep.subr.bf16.mxu1 %v3896_v0 }
 0x177   :  { %924 = vmatpush1.bf16.msra.mxu0 %v3044_v25  ;;  %2421 = vmatpush3.bf16.msra.mxu1 %v3048_v26 }
 0x178   :  { %1046 = vmatprep.subr.bf16.mxu0 %v2887_v2  ;;  %2426 = vmatprep.subr.bf16.mxu1 %v3896_v0  ;;  %v2125_v2 = vsel %vm2239_vm11, 1, %v3897_v1 }
 0x179   :  { %2127 = vperm.xlu1 %2579, %v2125_v2  }
 0x20d   :  { %v696_v55 = vpop.f32.mrf.mxu0  ;;  %v737_v16 = vpop.f32.mrf.mxu1 }
 0x20e   :  { %v697_v21 = vadd.f32 %v696_v55, %v3134_v63 }
 0x20f   :  { %v698_v9 = vpop.f32.mrf.mxu0  ;;  %v2396_v10 = vpop.f32.mrf.mxu1 }
 0x210   :  { %v743_v27 = vadd.f32 %v697_v21, %v615_v19  ;;  %v699_v29 = vadd.f32 %v698_v9, %v3138_v31  ;;  %v738_v10 = vadd.f32 %v737_v16, %v3144_v24  ;;  %v561_v9 = vsel %vm560_vm13, %v3153_v54, 0.0 }
 0x211   :  { %v700_v52 = vpop.f32.mrf.mxu0  ;;  %v740_v14 = vpop.f32.mrf.mxu1 }
 0x212   :  { %v744_v28 = vmul.f32 0.5, %v743_v27  ;;  %v748_v20 = vadd.f32 %v699_v29, %v617_v13  ;;  %v766_v27 = vpop.permute.xlu0 %765  ;;  %v3898_v14 = vunpack.c.l.b16 %v3177_v35  ;;  %v3904_v35 = vunpack.c.l.b16 %v3189_v15 }
 0x213   :  { %v701_v2 = vpop.f32.mrf.mxu0  ;;  %v2397_v18 = vpop.f32.mrf.mxu1  ;;  %vm767_vm12 = vcmp.eq.s32.totalorder %v766_v27, 1  ;;  %v3906_v27 = vunpack.c.l.b16 %v3200_v17 }
 0x214   :  { %2658 = vtanh.f32 %v744_v28  ;;  %v749_v26 = vmul.f32 0.5, %v748_v20  ;;  %v1016_v2 = vrot.slane %v3898_v14, 3 }
 0x216   :  { %2660 = vtanh.f32 %v749_v26 }
 0x221   :  { %v2659_v34 = vpop.eup %2658 }
 0x222   :  { %v746_v56 = vadd.f32 1.0, %v2659_v34 }
 0x223   :  { %v2661_v55 = vpop.eup %2660 }
 0x224   :  { %v747_v63 = vmul.f32 0.5, %v746_v56  ;;  %v751_v25 = vadd.f32 1.0, %v2661_v55 }
 0x226   :  { %v753_v19 = vmul.f32 %v747_v63, %v738_v10  ;;  %v752_v21 = vmul.f32 0.5, %v751_v25  ;;  %v3296_v25 = vpop.f32.mrf.mxu1 }
 0x228   :  { %v754_v18 = vadd.f32 %v753_v19, %v656_v8  ;;  %v758_v28 = vmul.f32 %v752_v21, %v561_v9  ;;  %v756_v26 = vsub.f32 1.0, %v752_v21  ;;  %v3901_v19 = vunpack.c.l.b16 %v3187_v32 }
 0x22a   :  { %2662 = vtanh.f32 %v754_v18  ;;  %v1022_v21 = vrot.slane %v3901_v19, 7 }
 0x237   :  { %v2663_v20 = vpop.eup %2662 }
 0x238   :  { %v757_v13 = vmul.f32 %v2663_v20, %v756_v26  ;;  %v1024_v26 = vrot.slane %v3904_v35, 6  ;;  %v3905_v20 = vunpack.c.l.b16 %v3196_v38  ;;  %v1013_v35 = vpop.permute.xlu1 %1012 }
 0x239   :  { %vm1014_vm13 = vcmp.eq.s32.totalorder %v1013_v35, 1 }
 0x23a   :  { %v759_v29 = vadd.f32 %v758_v28, %v757_v13 }
 0x23c   :  { %v3281_v56 = vsel %vm767_vm12, %v759_v29, %v561_v9  ;;  %v3902_v9 = vld [vmem:[#allocation17_spill] sm:$0xff]  ;;  %v1028_v29 = vrot.slane %v3906_v27, 4  ;;  %v3380_v27 = vld [vmem:[#allocation6 + $0x4] ss:$12 sps:$4 sm:$0xff]  }
 0x23d   :  { %v908_v12 = vpack.c.bf16 %v3281_v56, %v3281_v56  ;;  %v3903_v18 = vunpack.c.l.b16 %v3902_v9 }
 0x23f   :  { %942 = vmatmul.mubr.bf16.vlgmr.msra.gmra.mxu0 %v908_v12  ;;  %2423 = vmatmul.mubr.bf16.vlgmr.msra.gmra.mxu1 %v908_v12 }
 0x240   :  { %1047 = vmatpush1.bf16.msra.mxu0 %v2889_v3  ;;  %2427 = vmatpush3.bf16.msra.mxu1 %v2945_v33  ;;  %v861_v3 = vpop.f32.mrf.mxu0 }
 0x241   :  { %1048 = vmatprep.subr.bf16.mxu0 %v2892_v4  ;;  %1066 = vmatprep.mubr.bf16.mxu0 %v3897_v1  ;;  %v2404_v4 = vpop.f32.mrf.mxu1 }
 0x242   :  { %2428 = vmatprep.subr.bf16.mxu1 %v3896_v0  ;;  %2430 = vmatprep.mubr.msk.bf16.mxu1 %vm2825_vm0, %v3896_v0  ;;  %v3298_v63 = vpop.f32.mrf.mxu0 }
 0x243   :  { %v905_v54 = vpop.f32.mrf.mxu1  ;;  %v864_v14 = vadd.f32 %v3298_v63, %v3140_v7 }
 0x244   :  { %1049 = vmatpush1.bf16.msra.mxu0 %v2894_v5  ;;  %2429 = vmatpush3.bf16.msra.mxu1 %v2950_v36  ;;  %v865_v11 = vpop.f32.mrf.mxu0  ;;  %v3899_v5 = vunpack.c.l.b16 %v3179_v40 }
 0x245   :  { %1116 = vmatprep.subr.bf16.mxu0 %v2897_v6  ;;  %2434 = vmatprep.subr.bf16.mxu1 %v3896_v0  ;;  %v2405_v52 = vpop.f32.mrf.mxu1  ;;  %v3900_v6 = vunpack.c.l.b16 %v3185_v30  ;;  %v1026_v30 = vrot.slane %v3905_v20, 5 }
 0x246   :  { %v866_v16 = vpop.f32.mrf.mxu0  ;;  %v1017_v34 = vrot.slane %v3899_v5, 2 }
 0x247   :  { %v1019_v55 = vrot.slane %v3900_v6, 1 }
 0x248   :  { %v1018_v10 = vsel %vm173_vm1, %v1017_v34, %v1016_v2 }
 0x249   :  { %v1020_v8 = vsel %vm176_vm2, %v1019_v55, %v1018_v10  ;;  %v903_v10 = vadd.f32 %v3296_v25, %v3146_v37 }
 0x24a   :  { %v1021_v28 = vsel %vm179_vm3, %v3903_v18, %v1020_v8 }
 0x24b   :  { %v1023_v40 = vsel %vm182_vm4, %v1022_v21, %v1021_v28 }
 0x24c   :  { %v1025_v13 = vsel %vm185_vm5, %v1024_v26, %v1023_v40 }
 0x24d   :  { %v1027_v32 = vsel %vm188_vm6, %v1026_v30, %v1025_v13  ;;  %v3376_v13 = vld [vmem:[#allocation6 + $0x18] ss:$12 sps:$4 sm:$0xff]  }
 0x24e   :  { %v1029_v12 = vsel %vm191_vm7, %v1028_v29, %v1027_v32  ;;  %v3391_v29 = vld [vmem:[#allocation8 + $0xac] ss:$12 sps:$4 sm:$0xff]  }
 0x24f   :  { %v1030_v4 = vpack.c.b16 %v1029_v12, %v1029_v12 }
 0x251   :  { %2209 = vmatmul.mubr.msk.bf16.vlgmr.msra.gmra.mxu0 %vm226_vm8, %v1030_v4  ;;  %2431 = vmatmul.mubr.msk.bf16.vlgmr.msra.gmra.mxu1 %vm226_vm8, %v1030_v4 }
 0x252   :  { %1117 = vmatpush1.bf16.msra.mxu0 %v2955_v39  ;;  %2435 = vmatpush3.bf16.msra.mxu1 %v2960_v42  ;;  %v3907_v39 = vld [vmem:[#allocation13_spill] sm:$0xff] }
 0x253   :  { %1118 = vmatprep.subr.bf16.mxu0 %v2957_v41  ;;  %2436 = vmatprep.subr.bf16.mxu1 %v3896_v0  ;;  %v3908_v41 = vld [vmem:[#allocation14_spill] sm:$0xff]  ;;  %v3358_v42 = vld [vmem:[#allocation6 + $0x1c] ss:$12 sps:$4 sm:$0xff]  }
 0x254   :  { %1148 = vmatprep.mubr.bf16.mxu0 %v3897_v1  ;;  %2450 = vmatprep.mubr.msk.bf16.mxu1 %vm2825_vm0, %v3896_v0 }
 0x256   :  { %1119 = vmatpush1.bf16.msra.mxu0 %v2965_v43  ;;  %2437 = vmatpush3.bf16.msra.mxu1 %v2973_v45  ;;  %v3909_v45 = vld [vmem:[#allocation15_spill] sm:$0xff] }
 0x257   :  { %1120 = vmatprep.subr.bf16.mxu0 %v2969_v44  ;;  %2438 = vmatprep.subr.bf16.mxu1 %v3896_v0 }
 0x25a   :  { %1121 = vmatpush1.bf16.msra.mxu0 %v2979_v46  ;;  %2439 = vmatpush3.bf16.msra.mxu1 %v2985_v48  ;;  %v862_v46 = vadd.f32 %v861_v3, %v3909_v45 }
 0x25b   :  { %1122 = vmatprep.subr.bf16.mxu0 %v2982_v47  ;;  %2440 = vmatprep.subr.bf16.mxu1 %v3896_v0  ;;  %v3910_v47 = vld [vmem:[#allocation16_spill] sm:$0xff] }
 0x25e   :  { %1123 = vmatpush1.bf16.msra.mxu0 %v2987_v49  ;;  %2441 = vmatpush3.bf16.msra.mxu1 %v2993_v51 }
 0x25f   :  { %1124 = vmatprep.subr.bf16.mxu0 %v2991_v50  ;;  %2442 = vmatprep.subr.bf16.mxu1 %v3896_v0 }
 0x262   :  { %1125 = vmatpush1.bf16.msra.mxu0 %v3004_v53  ;;  %2443 = vmatpush3.bf16.msra.mxu1 %v3015_v58 }
 0x263   :  { %1126 = vmatprep.subr.bf16.mxu0 %v3011_v57  ;;  %2444 = vmatprep.subr.bf16.mxu1 %v3896_v0 }
 0x266   :  { %1127 = vmatpush1.bf16.msra.mxu0 %v3018_v59  ;;  %2445 = vmatpush3.bf16.msra.mxu1 %v3027_v61 }
 0x267   :  { %1128 = vmatprep.subr.bf16.mxu0 %v3021_v60  ;;  %2446 = vmatprep.subr.bf16.mxu1 %v3896_v0 }
 0x26a   :  { %1129 = vmatpush1.bf16.msra.mxu0 %v3031_v62  ;;  %2447 = vmatpush3.bf16.msra.mxu1 %v3040_v23 }
 0x26b   :  { %1130 = vmatprep.subr.bf16.mxu0 %v3037_v22  ;;  %2448 = vmatprep.subr.bf16.mxu1 %v3896_v0 }
 0x26e   :  { %1131 = vmatpush1.bf16.msra.mxu0 %v3907_v39  ;;  %2449 = vmatpush3.bf16.msra.mxu1 %v3908_v41 }
 0x26f   :  { %1293 = vmatprep.subr.bf16.mxu0 %v3358_v42  ;;  %2454 = vmatprep.subr.bf16.mxu1 %v3896_v0 }
 0x2ff   :  { %v943_v43 = vpop.f32.mrf.mxu0  ;;  %v984_v44 = vpop.f32.mrf.mxu1 }
 0x300   :  { %v944_v48 = vadd.f32 %v943_v43, %v3910_v47  ;;  %v985_v6 = vadd.f32 %v984_v44, %v3144_v24 }
 0x301   :  { %v945_v49 = vpop.f32.mrf.mxu0  ;;  %v2424_v50 = vpop.f32.mrf.mxu1 }
 0x302   :  { %v990_v15 = vadd.f32 %v944_v48, %v862_v46  ;;  %v946_v54 = vadd.f32 %v945_v49, %v3138_v31  ;;  %v3401_v49 = vld [vmem:[#allocation3] ss:$0 sps:$4 sm:$0x44]   ;;  %v3405_v50 = vld [vmem:[#allocation3 + $0x8] ss:$0 sps:$4 sm:$0x44]  }
 0x303   :  { %v947_v38 = vpop.f32.mrf.mxu0  ;;  %v987_v17 = vpop.f32.mrf.mxu1 }
 0x304   :  { %v991_v11 = vmul.f32 0.5, %v990_v15  ;;  %v995_v2 = vadd.f32 %v946_v54, %v864_v14  ;;  %v3407_v15 = vld [vmem:[#allocation3 + $0xc] ss:$0 sps:$4 sm:$0x44]   ;;  %v1255_v38 = vunpack.c.l.b16 %v3401_v49 }
 0x305   :  { %v948_v16 = vpop.f32.mrf.mxu0  ;;  %v2425_v52 = vpop.f32.mrf.mxu1  ;;  %v3412_v54 = vld [vmem:[#allocation3 + $0x14] ss:$0 sps:$4 sm:$0x44]  }
 0x306   :  { %2664 = vtanh.f32 %v991_v11  ;;  %v996_v5 = vmul.f32 0.5, %v995_v2  ;;  %v1257_v11 = vunpack.c.l.b16 %v3405_v50  ;;  %v1258_v16 = vunpack.c.l.b16 %v3407_v15  ;;  %v3419_v2 = vld [vmem:[#allocation3 + $0x10] ss:$0 sps:$4 sm:$0x44]  }
 0x307   :  { %v1263_v52 = vrot.slane %v1255_v38, 4 }
 0x308   :  { %2666 = vtanh.f32 %v996_v5  ;;  %v3421_v5 = vld [vmem:[#allocation3 + $0x18] ss:$0 sps:$4 sm:$0x44]  }
 0x311   :  { %v3397_v32 = vpop.f32.mrf.mxu1 }
 0x313   :  { %v2665_v3 = vpop.eup %2664  ;;  %v2432_v4 = vpop.f32.mrf.mxu1 }
 0x314   :  { %v993_v34 = vadd.f32 1.0, %v2665_v3  ;;  %v3423_v3 = vld [vmem:[#allocation3 + $0x1c] ss:$0 sps:$4 sm:$0x44]  }
 0x315   :  { %v2667_v21 = vpop.eup %2666  ;;  %v1112_v44 = vpop.f32.mrf.mxu1 }
 0x316   :  { %v994_v55 = vmul.f32 0.5, %v993_v34  ;;  %v998_v9 = vadd.f32 1.0, %v2667_v21  ;;  %v1260_v34 = vunpack.c.l.b16 %v3412_v54  ;;  %v1262_v21 = vunpack.c.l.b16 %v3423_v3  ;;  %v3453_v44 = vld [vmem:[#allocation8 + $0xb0] ss:$12 sps:$4 sm:$0xff]   ;;  %v3584_v54 = vld [vmem:[#allocation8 + $0x68] ss:$12 sps:$4 sm:$0xff]  }
 0x317   :  { %v2433_v48 = vpop.f32.mrf.mxu1  ;;  %v3599_v3 = vld [vmem:[#allocation8 + $0x30] ss:$12 sps:$4 sm:$0xff]  }
 0x318   :  { %v1000_v8 = vmul.f32 %v994_v55, %v985_v6  ;;  %v999_v18 = vmul.f32 0.5, %v998_v9  ;;  %v1266_v55 = vrot.slane %v1257_v11, 2  ;;  %v3463_v48 = vld [vmem:[#allocation8 + $0x90] ss:$12 sps:$4 sm:$0xff]   ;;  %v1482_v15 = vrot.slane %v1262_v21, 6 }
 0x31a   :  { %v1001_v19 = vadd.f32 %v1000_v8, %v903_v10  ;;  %v1003_v28 = vsub.f32 1.0, %v999_v18  ;;  %v1005_v40 = vmul.f32 %v999_v18, %v3281_v56  ;;  %v1268_v10 = vrot.slane %v1258_v16, 1 }
 0x31b   :  { %v1259_v8 = vunpack.c.l.b16 %v3419_v2  ;;  %v1271_v18 = vrot.slane %v1260_v34, 7  ;;  %v3592_v2 = vld [vmem:[#allocation8 + $0x50] ss:$12 sps:$4 sm:$0xff]  }
 0x31c   :  { %2668 = vtanh.f32 %v1001_v19  ;;  %v1261_v19 = vunpack.c.l.b16 %v3421_v5  ;;  %v3595_v5 = vld [vmem:[#allocation8 + $0x34] ss:$12 sps:$4 sm:$0xff]  }
 0x329   :  { %v2669_v63 = vpop.eup %2668 }
 0x32a   :  { %v1004_v26 = vmul.f32 %v2669_v63, %v1003_v28  ;;  %v1273_v63 = vrot.slane %v1261_v19, 6 }
 0x32c   :  { %v1006_v20 = vadd.f32 %v1005_v40, %v1004_v26  ;;  %v1275_v26 = vrot.slane %v1262_v21, 5  ;;  %v3612_v21 = vld [vmem:[#allocation8 + $0x20] ss:$12 sps:$4 sm:$0xff]  }
 0x32e   :  { %v3372_v30 = vsel %vm1014_vm13, %v1006_v20, %v3281_v56  ;;  %v3387_v56 = vld [vmem:[#allocation6] ss:$12 sps:$4 sm:$0xff]  }
 0x32f   :  { %v1115_v25 = vpack.c.bf16 %v3372_v30, %v3372_v30 }
 0x331   :  { %1149 = vmatmul.mubr.bf16.vlgmr.msra.gmra.mxu0 %v1115_v25  ;;  %2451 = vmatmul.mubr.bf16.vlgmr.msra.gmra.mxu1 %v1115_v25 }
 0x332   :  { %1294 = vmatpush1.bf16.msra.mxu0 %v3376_v13  ;;  %2455 = vmatpush3.bf16.msra.mxu1 %v2945_v33  ;;  %v3395_v33 = vpop.f32.mrf.mxu0 }
 0x333   :  { %1295 = vmatprep.subr.bf16.mxu0 %v3380_v27  ;;  %1313 = vmatprep.mubr.bf16.mxu0 %v3897_v1 }
 0x334   :  { %2456 = vmatprep.subr.bf16.mxu1 %v3896_v0  ;;  %2458 = vmatprep.mubr.msk.bf16.mxu1 %vm2825_vm0, %v3896_v0  ;;  %v3399_v12 = vpop.f32.mrf.mxu0 }
 0x336   :  { %1296 = vmatpush1.bf16.msra.mxu0 %v3387_v56  ;;  %2457 = vmatpush3.bf16.msra.mxu1 %v2950_v36  ;;  %v1072_v43 = vpop.f32.mrf.mxu0  ;;  %v3403_v36 = vld [vmem:[#allocation3 + $0x4] ss:$0 sps:$4 sm:$0x44]  }
 0x337   :  { %1363 = vmatprep.subr.bf16.mxu0 %v3391_v29  ;;  %2462 = vmatprep.subr.bf16.mxu1 %v3896_v0  ;;  %v1256_v17 = vunpack.c.l.b16 %v3403_v36  ;;  %v3450_v43 = vld [vmem:[#allocation8 + $0xa8] ss:$12 sps:$4 sm:$0xff]   ;;  %v1480_v36 = vrot.slane %v1261_v19, 7  ;;  %v3609_v19 = vld [vmem:[#allocation8 + $0x18] ss:$12 sps:$4 sm:$0xff]  }
 0x338   :  { %v1073_v46 = vpop.f32.mrf.mxu0 }
 0x339   :  { %v1264_v14 = vrot.slane %v1256_v17, 3  ;;  %v3456_v46 = vld [vmem:[#allocation8 + $0x94] ss:$12 sps:$4 sm:$0xff]  }
 0x33b   :  { %v1265_v6 = vsel %vm173_vm1, %v1264_v14, %v1263_v52  ;;  %v3466_v52 = vld [vmem:[#allocation8 + $0x98] ss:$12 sps:$4 sm:$0xff]   ;;  %v3469_v14 = vld [vmem:[#allocation8 + $0x7c] ss:$12 sps:$4 sm:$0xff]  }
 0x33c   :  { %v1267_v9 = vsel %vm176_vm2, %v1266_v55, %v1265_v6  ;;  %v3473_v6 = vld [vmem:[#allocation8 + $0x78] ss:$12 sps:$4 sm:$0xff]   ;;  %v3476_v55 = vld [vmem:[#allocation8 + $0x80] ss:$12 sps:$4 sm:$0xff]  }
 0x33d   :  { %v1269_v28 = vsel %vm179_vm3, %v1268_v10, %v1267_v9  ;;  %v3479_v10 = vld [vmem:[#allocation8 + $0x64] ss:$12 sps:$4 sm:$0xff]   ;;  %v3483_v9 = vld [vmem:[#allocation8 + $0x60] ss:$12 sps:$4 sm:$0xff]  }
 0x33e   :  { %v1270_v35 = vsel %vm182_vm4, %v1259_v8, %v1269_v28 }
 0x33f   :  { %v1272_v40 = vsel %vm185_vm5, %v1271_v18, %v1270_v35  ;;  %v3487_v18 = vld [vmem:[#allocation8 + $0x4c] ss:$12 sps:$4 sm:$0xff]  }
 0x340   :  { %v1274_v20 = vsel %vm188_vm6, %v1273_v63, %v1272_v40  ;;  %v1071_v63 = vadd.f32 %v3399_v12, %v3140_v7 }
 0x341   :  { %v1276_v25 = vsel %vm191_vm7, %v1275_v26, %v1274_v20 }
 0x342   :  { %v1277_v4 = vpack.c.b16 %v1276_v25, %v1276_v25 }
 0x344   :  { %2220 = vmatmul.mubr.msk.bf16.vlgmr.msra.gmra.mxu0 %vm226_vm8, %v1277_v4  ;;  %2459 = vmatmul.mubr.msk.bf16.vlgmr.msra.gmra.mxu1 %vm226_vm8, %v1277_v4  ;;  %v1110_v4 = vadd.f32 %v3397_v32, %v3146_v37 }
 0x345   :  { %1364 = vmatpush1.bf16.msra.mxu0 %v3450_v43  ;;  %2463 = vmatpush3.bf16.msra.mxu1 %v3453_v44 }
 0x346   :  { %1365 = vmatprep.subr.bf16.mxu0 %v3456_v46  ;;  %2464 = vmatprep.subr.bf16.mxu1 %v3896_v0 }
 0x347   :  { %1395 = vmatprep.mubr.bf16.mxu0 %v3897_v1  ;;  %2478 = vmatprep.mubr.msk.bf16.mxu1 %vm2825_vm0, %v3896_v0 }
 0x349   :  { %1366 = vmatpush1.bf16.msra.mxu0 %v3463_v48  ;;  %2465 = vmatpush3.bf16.msra.mxu1 %v3466_v52 }
 0x34a   :  { %1367 = vmatprep.subr.bf16.mxu0 %v3469_v14  ;;  %2466 = vmatprep.subr.bf16.mxu1 %v3896_v0 }
 0x34d   :  { %1368 = vmatpush1.bf16.msra.mxu0 %v3473_v6  ;;  %2467 = vmatpush3.bf16.msra.mxu1 %v3476_v55 }
 0x34e   :  { %1369 = vmatprep.subr.bf16.mxu0 %v3479_v10  ;;  %2468 = vmatprep.subr.bf16.mxu1 %v3896_v0 }
 0x351   :  { %1370 = vmatpush1.bf16.msra.mxu0 %v3483_v9  ;;  %2469 = vmatpush3.bf16.msra.mxu1 %v2993_v51 }
 0x352   :  { %1371 = vmatprep.subr.bf16.mxu0 %v3487_v18  ;;  %2470 = vmatprep.subr.bf16.mxu1 %v3896_v0 }
 0x355   :  { %1372 = vmatpush1.bf16.msra.mxu0 %v3004_v53  ;;  %2471 = vmatpush3.bf16.msra.mxu1 %v3015_v58 }
 0x356   :  { %1373 = vmatprep.subr.bf16.mxu0 %v3011_v57  ;;  %2472 = vmatprep.subr.bf16.mxu1 %v3896_v0  ;;  %v1069_v57 = vadd.f32 %v3395_v33, %v3909_v45 }
 0x359   :  { %1374 = vmatpush1.bf16.msra.mxu0 %v3018_v59  ;;  %2473 = vmatpush3.bf16.msra.mxu1 %v3027_v61 }
 0x35a   :  { %1375 = vmatprep.subr.bf16.mxu0 %v3021_v60  ;;  %2474 = vmatprep.subr.bf16.mxu1 %v3896_v0 }
 0x35d   :  { %1376 = vmatpush1.bf16.msra.mxu0 %v3031_v62  ;;  %2475 = vmatpush3.bf16.msra.mxu1 %v3040_v23 }
 0x35e   :  { %1377 = vmatprep.subr.bf16.mxu0 %v3037_v22  ;;  %2476 = vmatprep.subr.bf16.mxu1 %v3896_v0 }
 0x361   :  { %1378 = vmatpush1.bf16.msra.mxu0 %v3907_v39  ;;  %2477 = vmatpush3.bf16.msra.mxu1 %v3908_v41 }
 0x362   :  { %1500 = vmatprep.subr.bf16.mxu0 %v3358_v42  ;;  %2482 = vmatprep.subr.bf16.mxu1 %v3896_v0 }
 0x3f1   :  { %v1150_v51 = vpop.f32.mrf.mxu0  ;;  %v1191_v53 = vpop.f32.mrf.mxu1 }
 0x3f2   :  { %v1151_v58 = vadd.f32 %v1150_v51, %v3910_v47  ;;  %v1192_v20 = vadd.f32 %v1191_v53, %v3144_v24 }
 0x3f3   :  { %v1152_v59 = vpop.f32.mrf.mxu0  ;;  %v2452_v60 = vpop.f32.mrf.mxu1 }
 0x3f4   :  { %v1197_v61 = vadd.f32 %v1151_v58, %v1069_v57  ;;  %v1153_v39 = vadd.f32 %v1152_v59, %v3138_v31 }
 0x3f5   :  { %v1154_v62 = vpop.f32.mrf.mxu0  ;;  %v1194_v22 = vpop.f32.mrf.mxu1 }
 0x3f6   :  { %v1198_v23 = vmul.f32 0.5, %v1197_v61  ;;  %v1202_v35 = vadd.f32 %v1153_v39, %v1071_v63 }
 0x3f7   :  { %v1155_v41 = vpop.f32.mrf.mxu0  ;;  %v2453_v28 = vpop.f32.mrf.mxu1 }
 0x3f8   :  { %2670 = vtanh.f32 %v1198_v23  ;;  %v1203_v26 = vmul.f32 0.5, %v1202_v35  ;;  %v1220_v23 = vpop.permute.xlu1 %1219  ;;  %v3523_v41 = vld [vmem:[#allocation6 + $0x20] ss:$12 sps:$4 sm:$0xff]  }
 0x3f9   :  { %vm1221_vm14 = vcmp.eq.s32.totalorder %v1220_v23, 1  ;;  %v3622_v23 = vld [vmem:[#allocation8 + $0x8] ss:$12 sps:$4 sm:$0xff]  }
 0x3fa   :  { %2672 = vtanh.f32 %v1203_v26  ;;  %3911 = vst [vmem:[#allocation17_spill] sm:$0xff] %v3622_v23 }
 0x404   :  { %v3537_v28 = vpop.f32.mrf.mxu0  ;;  %v3539_v63 = vpop.f32.mrf.mxu1 }
 0x405   :  { %v2671_v33 = vpop.eup %2670 }
 0x406   :  { %v1200_v40 = vadd.f32 1.0, %v2671_v33  ;;  %v3541_v35 = vpop.f32.mrf.mxu0  ;;  %v2460_v26 = vpop.f32.mrf.mxu1 }
 0x407   :  { %v2673_v58 = vpop.eup %2672  ;;  %v1316_v26 = vadd.f32 %v3537_v28, %v3909_v45 }
 0x408   :  { %v1201_v25 = vmul.f32 0.5, %v1200_v40  ;;  %v1205_v59 = vadd.f32 1.0, %v2673_v58  ;;  %v1319_v33 = vpop.f32.mrf.mxu0  ;;  %v1359_v40 = vpop.f32.mrf.mxu1 }
 0x40a   :  { %v1207_v51 = vmul.f32 %v1201_v25, %v1192_v20  ;;  %v1206_v60 = vmul.f32 0.5, %v1205_v59  ;;  %v1320_v20 = vpop.f32.mrf.mxu0  ;;  %v2461_v25 = vpop.f32.mrf.mxu1  ;;  %v1475_v59 = vrot.slane %v1258_v16, 2  ;;  %v3589_v16 = vld [vmem:[#allocation8 + $0x48] ss:$12 sps:$4 sm:$0xff]  }
 0x40c   :  { %v1208_v57 = vadd.f32 %v1207_v51, %v1110_v4  ;;  %v1210_v61 = vsub.f32 1.0, %v1206_v60  ;;  %v1212_v22 = vmul.f32 %v1206_v60, %v3372_v30  ;;  %v1470_v4 = vrot.slane %v1255_v38, 5 }
 0x40d   :  { %v1471_v51 = vrot.slane %v1256_v17, 4 }
 0x40e   :  { %2674 = vtanh.f32 %v1208_v57  ;;  %v1473_v57 = vrot.slane %v1257_v11, 3 }
 0x40f   :  { %v1472_v58 = vsel %vm173_vm1, %v1471_v51, %v1470_v4 }
 0x410   :  { %v1474_v60 = vsel %vm176_vm2, %v1473_v57, %v1472_v58 }
 0x41b   :  { %v2675_v12 = vpop.eup %2674 }
 0x41c   :  { %v1211_v62 = vmul.f32 %v2675_v12, %v1210_v61  ;;  %v1477_v61 = vrot.slane %v1259_v8, 1  ;;  %v1476_v12 = vsel %vm179_vm3, %v1475_v59, %v1474_v60  ;;  %v3605_v8 = vld [vmem:[#allocation8 + $0x1c] ss:$12 sps:$4 sm:$0xff]  }
 0x41e   :  { %v1213_v39 = vadd.f32 %v1212_v22, %v1211_v62  ;;  %v1478_v49 = vsel %vm182_vm4, %v1477_v61, %v1476_v12  ;;  %v3615_v62 = vld [vmem:[#allocation8 + $0x4] ss:$12 sps:$4 sm:$0xff]   ;;  %v3619_v22 = vld [vmem:[#allocation8] ss:$12 sps:$4 sm:$0xff]   ;;  %v1318_v61 = vadd.f32 %v3541_v35, %v3140_v7 }
 0x41f   :  { %v1479_v50 = vsel %vm185_vm5, %v1260_v34, %v1478_v49  ;;  %v3602_v34 = vld [vmem:[#allocation8 + $0x38] ss:$12 sps:$4 sm:$0xff]  }
 0x420   :  { %v3518_v53 = vsel %vm1221_vm14, %v1213_v39, %v3372_v30  ;;  %v3532_v30 = vld [vmem:[#allocation6 + $0x8] ss:$12 sps:$4 sm:$0xff]   ;;  %v1481_v38 = vsel %vm188_vm6, %v1480_v36, %v1479_v50 }
 0x421   :  { %v1362_v32 = vpack.c.bf16 %v3518_v53, %v3518_v53  ;;  %v1483_v17 = vsel %vm191_vm7, %v1482_v15, %v1481_v38  ;;  %v1357_v38 = vadd.f32 %v3539_v63, %v3146_v37 }
 0x422   :  { %v1484_v11 = vpack.c.b16 %v1483_v17, %v1483_v17 }
 0x423   :  { %1396 = vmatmul.mubr.bf16.vlgmr.msra.gmra.mxu0 %v1362_v32  ;;  %2479 = vmatmul.mubr.bf16.vlgmr.msra.gmra.mxu1 %v1362_v32 }
 0x424   :  { %1501 = vmatpush1.bf16.msra.mxu0 %v3376_v13  ;;  %2483 = vmatpush3.bf16.msra.mxu1 %v3523_v41 }
 0x425   :  { %1502 = vmatprep.subr.bf16.mxu0 %v3380_v27  ;;  %1520 = vmatprep.mubr.bf16.mxu0 %v3897_v1 }
 0x426   :  { %2484 = vmatprep.subr.bf16.mxu1 %v3896_v0  ;;  %2486 = vmatprep.mubr.msk.bf16.mxu1 %vm2825_vm0, %v3896_v0 }
 0x428   :  { %1503 = vmatpush1.bf16.msra.mxu0 %v3387_v56  ;;  %2485 = vmatpush3.bf16.msra.mxu1 %v3532_v30 }
 0x429   :  { %1570 = vmatprep.subr.bf16.mxu0 %v3391_v29  ;;  %2490 = vmatprep.subr.bf16.mxu1 %v3896_v0 }
 0x42b   :  { %2223 = vmatmul.mubr.msk.bf16.vlgmr.msra.gmra.mxu0 %vm226_vm8, %v1484_v11  ;;  %2487 = vmatmul.mubr.msk.bf16.vlgmr.msra.gmra.mxu1 %vm226_vm8, %v1484_v11 }
 0x42c   :  { %1571 = vmatpush1.bf16.msra.mxu0 %v3450_v43  ;;  %2491 = vmatpush3.bf16.msra.mxu1 %v3453_v44 }
 0x42d   :  { %1572 = vmatprep.subr.bf16.mxu0 %v3456_v46  ;;  %2492 = vmatprep.subr.bf16.mxu1 %v3896_v0 }
 0x42e   :  { %1602 = vmatprep.mubr.bf16.mxu0 %v3897_v1  ;;  %2506 = vmatprep.mubr.msk.bf16.mxu1 %vm2825_vm0, %v3896_v0 }
 0x430   :  { %1573 = vmatpush1.bf16.msra.mxu0 %v3463_v48  ;;  %2493 = vmatpush3.bf16.msra.mxu1 %v3466_v52 }
 0x431   :  { %1574 = vmatprep.subr.bf16.mxu0 %v3469_v14  ;;  %2494 = vmatprep.subr.bf16.mxu1 %v3896_v0 }
 0x434   :  { %1575 = vmatpush1.bf16.msra.mxu0 %v3473_v6  ;;  %2495 = vmatpush3.bf16.msra.mxu1 %v3476_v55 }
 0x435   :  { %1576 = vmatprep.subr.bf16.mxu0 %v3479_v10  ;;  %2496 = vmatprep.subr.bf16.mxu1 %v3896_v0 }
 0x438   :  { %1577 = vmatpush1.bf16.msra.mxu0 %v3483_v9  ;;  %2497 = vmatpush3.bf16.msra.mxu1 %v3584_v54 }
 0x439   :  { %1578 = vmatprep.subr.bf16.mxu0 %v3487_v18  ;;  %2498 = vmatprep.subr.bf16.mxu1 %v3896_v0 }
 0x43c   :  { %1579 = vmatpush1.bf16.msra.mxu0 %v3589_v16  ;;  %2499 = vmatpush3.bf16.msra.mxu1 %v3592_v2 }
 0x43d   :  { %1580 = vmatprep.subr.bf16.mxu0 %v3595_v5  ;;  %2500 = vmatprep.subr.bf16.mxu1 %v3896_v0 }
 0x440   :  { %1581 = vmatpush1.bf16.msra.mxu0 %v3599_v3  ;;  %2501 = vmatpush3.bf16.msra.mxu1 %v3602_v34 }
 0x441   :  { %1582 = vmatprep.subr.bf16.mxu0 %v3605_v8  ;;  %2502 = vmatprep.subr.bf16.mxu1 %v3896_v0 }
 0x444   :  { %1583 = vmatpush1.bf16.msra.mxu0 %v3609_v19  ;;  %2503 = vmatpush3.bf16.msra.mxu1 %v3612_v21 }
 0x445   :  { %1584 = vmatprep.subr.bf16.mxu0 %v3615_v62  ;;  %2504 = vmatprep.subr.bf16.mxu1 %v3896_v0 }
 0x448   :  { %1585 = vmatpush1.bf16.msra.mxu0 %v3619_v22  ;;  %2505 = vmatpush3.bf16.msra.mxu1 %v3622_v23 }
 0x449   :  { %1747 = vmatprep.subr.bf16.mxu0 %v3358_v42  ;;  %2510 = vmatprep.subr.bf16.mxu1 %v3896_v0 }
 0x4e3   :  { %v1397_v39 = vpop.f32.mrf.mxu0  ;;  %v1438_v32 = vpop.f32.mrf.mxu1 }
 0x4e4   :  { %v1398_v33 = vadd.f32 %v1397_v39, %v3910_v47  ;;  %v1439_v50 = vadd.f32 %v1438_v32, %v3144_v24 }
 0x4e5   :  { %v1399_v40 = vpop.f32.mrf.mxu0  ;;  %v2480_v20 = vpop.f32.mrf.mxu1 }
 0x4e6   :  { %v1444_v25 = vadd.f32 %v1398_v33, %v1316_v26  ;;  %v1400_v58 = vadd.f32 %v1399_v40, %v3138_v31 }
 0x4e7   :  { %v1401_v4 = vpop.f32.mrf.mxu0  ;;  %v1441_v51 = vpop.f32.mrf.mxu1 }
 0x4e8   :  { %v1445_v57 = vmul.f32 0.5, %v1444_v25  ;;  %v1449_v12 = vadd.f32 %v1400_v58, %v1318_v61  ;;  %v1467_v4 = vpop.permute.xlu0 %1466 }
 0x4e9   :  { %v1402_v59 = vpop.f32.mrf.mxu0  ;;  %v2481_v60 = vpop.f32.mrf.mxu1  ;;  %vm1468_vm15 = vcmp.eq.s32.totalorder %v1467_v4, 1  ;;  %v3682_v4 = vld [vmem:[#allocation3 + $0x1c] ss:$0 sps:$4 sm:$0x88]  }
 0x4ea   :  { %2676 = vtanh.f32 %v1445_v57  ;;  %v1450_v49 = vmul.f32 0.5, %v1449_v12 }
 0x4eb   :  { %v3655_v57 = vpop.f32.mrf.mxu1 }
 0x4ec   :  { %2678 = vtanh.f32 %v1450_v49 }
 0x4ed   :  { %v2488_v59 = vpop.f32.mrf.mxu1 }
 0x4ef   :  { %v1566_v61 = vpop.f32.mrf.mxu1 }
 0x4f1   :  { %v2489_v49 = vpop.f32.mrf.mxu1 }
 0x4f2   :  { %v3886_v49 = vunpack.c.l.b16 %v3682_v4 }
 0x4f7   :  { %v2677_v28 = vpop.eup %2676 }
 0x4f8   :  { %v1447_v36 = vadd.f32 1.0, %v2677_v28  ;;  %v3659_v28 = vld [vmem:[#allocation3] ss:$0 sps:$4 sm:$0x88]  }
 0x4f9   :  { %v2679_v39 = vpop.eup %2678 }
 0x4fa   :  { %v1448_v15 = vmul.f32 0.5, %v1447_v36  ;;  %v1452_v26 = vadd.f32 1.0, %v2679_v39  ;;  %v3661_v36 = vld [vmem:[#allocation3 + $0x4] ss:$0 sps:$4 sm:$0x88]  }
 0x4fc   :  { %v1454_v17 = vmul.f32 %v1448_v15, %v1439_v50  ;;  %v1453_v33 = vmul.f32 0.5, %v1452_v26  ;;  %v3663_v50 = vld [vmem:[#allocation3 + $0x8] ss:$0 sps:$4 sm:$0x88]  }
 0x4fd   :  { %v3665_v15 = vld [vmem:[#allocation3 + $0xc] ss:$0 sps:$4 sm:$0x88]   ;;  %v3881_v39 = vunpack.c.l.b16 %v3663_v50  ;;  %v3672_v26 = vld [vmem:[#allocation3 + $0x14] ss:$0 sps:$4 sm:$0x88]  }
 0x4fe   :  { %v1455_v11 = vadd.f32 %v1454_v17, %v1357_v38  ;;  %v1457_v40 = vsub.f32 1.0, %v1453_v33  ;;  %v1459_v25 = vmul.f32 %v1453_v33, %v3518_v53  ;;  %v3883_v38 = vunpack.c.l.b16 %v3659_v28 }
 0x4ff   :  { %v3882_v17 = vunpack.c.l.b16 %v3661_v36  ;;  %v3884_v33 = vunpack.c.l.b16 %v3665_v15 }
 0x500   :  { %2680 = vtanh.f32 %v1455_v11  ;;  %v3669_v11 = vld [vmem:[#allocation3 + $0x10] ss:$0 sps:$4 sm:$0x88]  }
 0x501   :  { %v1722_v59 = vrot.slane %v3884_v33, 3  ;;  %v1729_v33 = vrot.slane %v3886_v49, 7 }
 0x50d   :  { %v2681_v35 = vpop.eup %2680 }
 0x50e   :  { %v1458_v20 = vmul.f32 %v2681_v35, %v1457_v40  ;;  %v1717_v40 = vrot.slane %v3883_v38, 6  ;;  %v1718_v35 = vrot.slane %v3882_v17, 5 }
 0x510   :  { %v1460_v51 = vadd.f32 %v1459_v25, %v1458_v20  ;;  %v3885_v20 = vunpack.c.l.b16 %v3669_v11  ;;  %v1720_v25 = vrot.slane %v3881_v39, 4 }
 0x512   :  { %v3638_v32 = vsel %vm1468_vm15, %v1460_v51, %v3518_v53  ;;  %v3653_v53 = vpop.f32.mrf.mxu0  ;;  %v3888_v51 = vunpack.c.l.b16 %v3672_v26 }
 0x513   :  { %v1569_v63 = vpack.c.bf16 %v3638_v32, %v3638_v32 }
 0x514   :  { %v3657_v58 = vpop.f32.mrf.mxu0  ;;  %v1726_v17 = vrot.slane %v3888_v51, 1 }
 0x515   :  { %1603 = vmatmul.mubr.bf16.vlgmr.msra.gmra.mxu0 %v1569_v63  ;;  %2507 = vmatmul.mubr.bf16.vlgmr.msra.gmra.mxu1 %v1569_v63  ;;  %v1719_v63 = vsel %vm173_vm1, %v1718_v35, %v1717_v40 }
 0x516   :  { %1748 = vmatpush1.bf16.msra.mxu0 %v3376_v13  ;;  %2511 = vmatpush3.bf16.msra.mxu1 %v3523_v41  ;;  %v1526_v60 = vpop.f32.mrf.mxu0  ;;  %v1721_v61 = vsel %vm176_vm2, %v1720_v25, %v1719_v63 }
 0x517   :  { %1749 = vmatprep.subr.bf16.mxu0 %v3380_v27  ;;  %1767 = vmatprep.mubr.bf16.mxu0 %v3897_v1  ;;  %v3688_v60 = vld [vmem:[#allocation3 + $0x18] ss:$0 sps:$4 sm:$0x88]   ;;  %v1723_v39 = vsel %vm179_vm3, %v1722_v59, %v1721_v61 }
 0x518   :  { %2512 = vmatprep.subr.bf16.mxu1 %v3896_v0  ;;  %2514 = vmatprep.mubr.msk.bf16.mxu1 %vm2825_vm0, %v3896_v0  ;;  %v1527_v12 = vpop.f32.mrf.mxu0  ;;  %v3887_v38 = vunpack.c.l.b16 %v3688_v60 }
 0x519   :  { %v1724_v12 = vrot.slane %v3885_v20, 2 }
 0x51a   :  { %1750 = vmatpush1.bf16.msra.mxu0 %v3387_v56  ;;  %2513 = vmatpush3.bf16.msra.mxu1 %v3532_v30 }
 0x51b   :  { %1817 = vmatprep.subr.bf16.mxu0 %v3391_v29  ;;  %2518 = vmatprep.subr.bf16.mxu1 %v3896_v0  ;;  %v1725_v40 = vsel %vm182_vm4, %v1724_v12, %v1723_v39 }
 0x51c   :  { %v1727_v35 = vsel %vm185_vm5, %v1726_v17, %v1725_v40 }
 0x51d   :  { %v1728_v25 = vsel %vm188_vm6, %v3887_v38, %v1727_v35 }
 0x51e   :  { %v1730_v63 = vsel %vm191_vm7, %v1729_v33, %v1728_v25  ;;  %v1523_v33 = vadd.f32 %v3653_v53, %v3909_v45 }
 0x51f   :  { %v1731_v20 = vpack.c.b16 %v1730_v63, %v1730_v63 }
 0x521   :  { %2234 = vmatmul.mubr.msk.bf16.vlgmr.msra.gmra.mxu0 %vm226_vm8, %v1731_v20  ;;  %2515 = vmatmul.mubr.msk.bf16.vlgmr.msra.gmra.mxu1 %vm226_vm8, %v1731_v20 }
 0x522   :  { %1818 = vmatpush1.bf16.msra.mxu0 %v3450_v43  ;;  %2519 = vmatpush3.bf16.msra.mxu1 %v3453_v44 }
 0x523   :  { %1819 = vmatprep.subr.bf16.mxu0 %v3456_v46  ;;  %2520 = vmatprep.subr.bf16.mxu1 %v3896_v0 }
 0x524   :  { %1849 = vmatprep.mubr.bf16.mxu0 %v3897_v1  ;;  %2534 = vmatprep.mubr.msk.bf16.mxu1 %vm2825_vm0, %v3896_v0 }
 0x526   :  { %1820 = vmatpush1.bf16.msra.mxu0 %v3463_v48  ;;  %2521 = vmatpush3.bf16.msra.mxu1 %v3466_v52 }
 0x527   :  { %1821 = vmatprep.subr.bf16.mxu0 %v3469_v14  ;;  %2522 = vmatprep.subr.bf16.mxu1 %v3896_v0 }
 0x52a   :  { %1822 = vmatpush1.bf16.msra.mxu0 %v3473_v6  ;;  %2523 = vmatpush3.bf16.msra.mxu1 %v3476_v55 }
 0x52b   :  { %1823 = vmatprep.subr.bf16.mxu0 %v3479_v10  ;;  %2524 = vmatprep.subr.bf16.mxu1 %v3896_v0 }
 0x52e   :  { %1824 = vmatpush1.bf16.msra.mxu0 %v3483_v9  ;;  %2525 = vmatpush3.bf16.msra.mxu1 %v3584_v54 }
 0x52f   :  { %1825 = vmatprep.subr.bf16.mxu0 %v3487_v18  ;;  %2526 = vmatprep.subr.bf16.mxu1 %v3896_v0 }
 0x532   :  { %1826 = vmatpush1.bf16.msra.mxu0 %v3589_v16  ;;  %2527 = vmatpush3.bf16.msra.mxu1 %v3592_v2 }
 0x533   :  { %1827 = vmatprep.subr.bf16.mxu0 %v3595_v5  ;;  %2528 = vmatprep.subr.bf16.mxu1 %v3896_v0 }
 0x536   :  { %1828 = vmatpush1.bf16.msra.mxu0 %v3599_v3  ;;  %2529 = vmatpush3.bf16.msra.mxu1 %v3602_v34 }
 0x537   :  { %1829 = vmatprep.subr.bf16.mxu0 %v3605_v8  ;;  %2530 = vmatprep.subr.bf16.mxu1 %v3896_v0 }
 0x53a   :  { %1830 = vmatpush1.bf16.msra.mxu0 %v3609_v19  ;;  %2531 = vmatpush3.bf16.msra.mxu1 %v3612_v21 }
 0x53b   :  { %1831 = vmatprep.subr.bf16.mxu0 %v3615_v62  ;;  %2532 = vmatprep.subr.bf16.mxu1 %v3896_v0 }
 0x53e   :  { %1832 = vmatpush1.bf16.msra.mxu0 %v3619_v22  ;;  %2533 = vmatpush3.bf16.msra.mxu1 %v3622_v23 }
 0x53f   :  { %1954 = vmatprep.subr.bf16.mxu0 %v3358_v42  ;;  %2538 = vmatprep.subr.bf16.mxu1 %v3896_v0  ;;  %v1525_v42 = vadd.f32 %v3657_v58, %v3140_v7 }
 0x5d5   :  { %v1604_v17 = vpop.f32.mrf.mxu0  ;;  %v1645_v39 = vpop.f32.mrf.mxu1 }
 0x5d6   :  { %v1605_v20 = vadd.f32 %v1604_v17, %v3910_v47  ;;  %v1646_v17 = vadd.f32 %v1645_v39, %v3144_v24 }
 0x5d7   :  { %v1606_v59 = vpop.f32.mrf.mxu0  ;;  %v2508_v61 = vpop.f32.mrf.mxu1 }
 0x5d8   :  { %v1651_v12 = vadd.f32 %v1605_v20, %v1523_v33  ;;  %v1607_v63 = vadd.f32 %v1606_v59, %v3138_v31  ;;  %v1564_v33 = vadd.f32 %v3655_v57, %v3146_v37 }
 0x5d9   :  { %v1608_v40 = vpop.f32.mrf.mxu0  ;;  %v1648_v35 = vpop.f32.mrf.mxu1 }
 0x5da   :  { %v1652_v25 = vmul.f32 0.5, %v1651_v12  ;;  %v1656_v51 = vadd.f32 %v1607_v63, %v1525_v42 }
 0x5db   :  { %v1609_v49 = vpop.f32.mrf.mxu0  ;;  %v2509_v38 = vpop.f32.mrf.mxu1 }
 0x5dc   :  { %2682 = vtanh.f32 %v1652_v25  ;;  %v1657_v23 = vmul.f32 0.5, %v1656_v51 }
 0x5de   :  { %2684 = vtanh.f32 %v1657_v23  ;;  %v1674_v23 = vpop.permute.xlu1 %1673 }
 0x5df   :  { %vm1675_vm9 = vcmp.eq.s32.totalorder %v1674_v23, 1 }
 0x5e9   :  { %v2683_v53 = vpop.eup %2682 }
 0x5ea   :  { %v1654_v45 = vadd.f32 1.0, %v2683_v53 }
 0x5eb   :  { %v2685_v49 = vpop.eup %2684 }
 0x5ec   :  { %v1655_v61 = vmul.f32 0.5, %v1654_v45  ;;  %v1659_v38 = vadd.f32 1.0, %v2685_v49 }
 0x5ee   :  { %v1661_v20 = vmul.f32 %v1655_v61, %v1646_v17  ;;  %v1660_v59 = vmul.f32 0.5, %v1659_v38  ;;  %v3912_v17 = vunpack.c.l.b16 %v3659_v28  ;;  %v3917_v28 = vunpack.c.l.b16 %v3672_v26 }
 0x5f0   :  { %v1662_v12 = vadd.f32 %v1661_v20, %v1564_v33  ;;  %v1664_v40 = vsub.f32 1.0, %v1660_v59  ;;  %v1666_v51 = vmul.f32 %v1660_v59, %v3638_v32  ;;  %v1924_v61 = vrot.slane %v3912_v17, 7 }
 0x5f1   :  { %v3916_v59 = vunpack.c.l.b16 %v3669_v11 }
 0x5f2   :  { %2686 = vtanh.f32 %v1662_v12  ;;  %v3915_v12 = vunpack.c.l.b16 %v3665_v15 }
 0x5f4   :  { %v1929_v49 = vrot.slane %v3915_v12, 4 }
 0x5ff   :  { %v2687_v58 = vpop.eup %2686 }
 0x600   :  { %v1665_v35 = vmul.f32 %v2687_v58, %v1664_v40  ;;  %v1931_v40 = vrot.slane %v3916_v59, 3 }
 0x602   :  { %v1667_v25 = vadd.f32 %v1666_v51, %v1665_v35  ;;  %v1933_v35 = vrot.slane %v3917_v28, 2 }
 0x604   :  { %v3754_v39 = vsel %vm1675_vm9, %v1667_v25, %v3638_v32  ;;  %v3769_v32 = vpop.f32.mrf.mxu1  ;;  %v3919_v25 = vunpack.c.l.b16 %v3682_v4 }
 0x605   :  { %v1816_v45 = vpack.c.bf16 %v3754_v39, %v3754_v39 }
 0x607   :  { %1850 = vmatmul.mubr.bf16.vlgmr.msra.gmra.mxu0 %v1816_v45  ;;  %2535 = vmatmul.mubr.bf16.vlgmr.msra.gmra.mxu1 %v1816_v45 }
 0x608   :  { %1955 = vmatpush1.bf16.msra.mxu0 %v3376_v13  ;;  %2539 = vmatpush3.bf16.msra.mxu1 %v3523_v41  ;;  %v1769_v13 = vpop.f32.mrf.mxu0 }
 0x609   :  { %1956 = vmatprep.subr.bf16.mxu0 %v3380_v27  ;;  %1974 = vmatprep.mubr.bf16.mxu0 %v3897_v1  ;;  %v2516_v27 = vpop.f32.mrf.mxu1 }
 0x60a   :  { %2540 = vmatprep.subr.bf16.mxu1 %v3896_v0  ;;  %2542 = vmatprep.mubr.msk.bf16.mxu1 %vm2825_vm0, %v3896_v0  ;;  %v3771_v41 = vpop.f32.mrf.mxu0 }
 0x60b   :  { %v1813_v63 = vpop.f32.mrf.mxu1 }
 0x60c   :  { %1957 = vmatpush1.bf16.msra.mxu0 %v3387_v56  ;;  %2541 = vmatpush3.bf16.msra.mxu1 %v3532_v30  ;;  %v1773_v57 = vpop.f32.mrf.mxu0  ;;  %v3913_v56 = vunpack.c.l.b16 %v3661_v36 }
 0x60d   :  { %2024 = vmatprep.subr.bf16.mxu0 %v3391_v29  ;;  %2546 = vmatprep.subr.bf16.mxu1 %v3896_v0  ;;  %v2517_v53 = vpop.f32.mrf.mxu1  ;;  %v3914_v29 = vunpack.c.l.b16 %v3663_v50  ;;  %v3918_v50 = vunpack.c.l.b16 %v3688_v60  ;;  %v1921_v57 = vpop.permute.xlu0 %1920 }
 0x60e   :  { %v1774_v42 = vpop.f32.mrf.mxu0  ;;  %v1925_v30 = vrot.slane %v3913_v56, 6 }
 0x60f   :  { %v1927_v33 = vrot.slane %v3914_v29, 5  ;;  %v1935_v51 = vrot.slane %v3918_v50, 1 }
 0x610   :  { %v1926_v20 = vsel %vm173_vm1, %v1925_v30, %v1924_v61 }
 0x611   :  { %v1928_v38 = vsel %vm176_vm2, %v1927_v33, %v1926_v20 }
 0x612   :  { %v1930_v58 = vsel %vm179_vm3, %v1929_v49, %v1928_v38 }
 0x613   :  { %v1932_v36 = vsel %vm182_vm4, %v1931_v40, %v1930_v58 }
 0x614   :  { %v1934_v23 = vsel %vm185_vm5, %v1933_v35, %v1932_v36 }
 0x615   :  { %v1936_v15 = vsel %vm188_vm6, %v1935_v51, %v1934_v23 }
 0x616   :  { %v1937_v45 = vsel %vm191_vm7, %v3919_v25, %v1936_v15 }
 0x617   :  { %v1938_v11 = vpack.c.b16 %v1937_v45, %v1937_v45 }
 0x619   :  { %2237 = vmatmul.mubr.msk.bf16.vlgmr.msra.gmra.mxu0 %vm226_vm8, %v1938_v11  ;;  %2543 = vmatmul.mubr.msk.bf16.vlgmr.msra.gmra.mxu1 %vm226_vm8, %v1938_v11 }
 0x61a   :  { %2025 = vmatpush1.bf16.msra.mxu0 %v3450_v43  ;;  %2547 = vmatpush3.bf16.msra.mxu1 %v3453_v44 }
 0x61b   :  { %2026 = vmatprep.subr.bf16.mxu0 %v3456_v46  ;;  %2548 = vmatprep.subr.bf16.mxu1 %v3896_v0  ;;  %v3921_v46 = vld [vmem:[#allocation15_spill] sm:$0xff] }
 0x61c   :  { %2056 = vmatprep.mubr.bf16.mxu0 %v3897_v1  ;;  %2562 = vmatprep.mubr.msk.bf16.mxu1 %vm2825_vm0, %v3896_v0  ;;  %v3920_v1 = vld [vmem:[#allocation17_spill] sm:$0xff]  ;;  %vm1922_vm0 = vcmp.eq.s32.totalorder %v1921_v57, 1 }
 0x61e   :  { %2027 = vmatpush1.bf16.msra.mxu0 %v3463_v48  ;;  %2549 = vmatpush3.bf16.msra.mxu1 %v3466_v52  ;;  %v1770_v48 = vadd.f32 %v1769_v13, %v3921_v46 }
 0x61f   :  { %2028 = vmatprep.subr.bf16.mxu0 %v3469_v14  ;;  %2550 = vmatprep.subr.bf16.mxu1 %v3896_v0 }
 0x622   :  { %2029 = vmatpush1.bf16.msra.mxu0 %v3473_v6  ;;  %2551 = vmatpush3.bf16.msra.mxu1 %v3476_v55 }
 0x623   :  { %2030 = vmatprep.subr.bf16.mxu0 %v3479_v10  ;;  %2552 = vmatprep.subr.bf16.mxu1 %v3896_v0 }
 0x626   :  { %2031 = vmatpush1.bf16.msra.mxu0 %v3483_v9  ;;  %2553 = vmatpush3.bf16.msra.mxu1 %v3584_v54 }
 0x627   :  { %2032 = vmatprep.subr.bf16.mxu0 %v3487_v18  ;;  %2554 = vmatprep.subr.bf16.mxu1 %v3896_v0 }
 0x62a   :  { %2033 = vmatpush1.bf16.msra.mxu0 %v3589_v16  ;;  %2555 = vmatpush3.bf16.msra.mxu1 %v3592_v2  ;;  %v1772_v2 = vadd.f32 %v3771_v41, %v3140_v7 }
 0x62b   :  { %2034 = vmatprep.subr.bf16.mxu0 %v3595_v5  ;;  %2556 = vmatprep.subr.bf16.mxu1 %v3896_v0 }
 0x62e   :  { %2035 = vmatpush1.bf16.msra.mxu0 %v3599_v3  ;;  %2557 = vmatpush3.bf16.msra.mxu1 %v3602_v34 }
 0x62f   :  { %2036 = vmatprep.subr.bf16.mxu0 %v3605_v8  ;;  %2558 = vmatprep.subr.bf16.mxu1 %v3896_v0 }
 0x632   :  { %2037 = vmatpush1.bf16.msra.mxu0 %v3609_v19  ;;  %2559 = vmatpush3.bf16.msra.mxu1 %v3612_v21 }
 0x633   :  { %2038 = vmatprep.subr.bf16.mxu0 %v3615_v62  ;;  %2560 = vmatprep.subr.bf16.mxu1 %v3896_v0  ;;  %v1811_v62 = vadd.f32 %v3769_v32, %v3146_v37 }
 0x636   :  { %2039 = vmatpush1.bf16.msra.mxu0 %v3619_v22  ;;  %2561 = vmatpush3.bf16.msra.mxu1 %v3920_v1 }
 0x6c7   :  { %v1851_v43 = vpop.f32.mrf.mxu0  ;;  %v1892_v44 = vpop.f32.mrf.mxu1 }
 0x6c8   :  { %v1852_v52 = vadd.f32 %v1851_v43, %v3910_v47  ;;  %v1893_v19 = vadd.f32 %v1892_v44, %v3144_v24 }
 0x6c9   :  { %v1853_v14 = vpop.f32.mrf.mxu0  ;;  %v2536_v6 = vpop.f32.mrf.mxu1 }
 0x6ca   :  { %v1898_v55 = vadd.f32 %v1852_v52, %v1770_v48  ;;  %v1854_v54 = vadd.f32 %v1853_v14, %v3138_v31 }
 0x6cb   :  { %v1855_v10 = vpop.f32.mrf.mxu0  ;;  %v1895_v9 = vpop.f32.mrf.mxu1 }
 0x6cc   :  { %v1899_v18 = vmul.f32 0.5, %v1898_v55  ;;  %v1903_v5 = vadd.f32 %v1854_v54, %v1772_v2 }
 0x6cd   :  { %v1856_v16 = vpop.f32.mrf.mxu0  ;;  %v2537_v0 = vpop.f32.mrf.mxu1 }
 0x6ce   :  { %2688 = vtanh.f32 %v1899_v18  ;;  %v1904_v3 = vmul.f32 0.5, %v1903_v5 }
 0x6d0   :  { %2690 = vtanh.f32 %v1904_v3 }
 0x6d9   :  { %v1976_v32 = vpop.f32.mrf.mxu0  ;;  %v2017_v56 = vpop.f32.mrf.mxu1 }
 0x6da   :  { %v1977_v40 = vadd.f32 %v1976_v32, %v3921_v46  ;;  %v2018_v48 = vadd.f32 %v2017_v56, %v3146_v37 }
 0x6db   :  { %v2689_v34 = vpop.eup %2688  ;;  %v1978_v30 = vpop.f32.mrf.mxu0 }
 0x6dc   :  { %v1901_v8 = vadd.f32 1.0, %v2689_v34  ;;  %v2544_v29 = vpop.f32.mrf.mxu1  ;;  %v1979_v45 = vadd.f32 %v1978_v30, %v3140_v7  ;;  %v2128_v7 = vpop.permute.xlu1 %2127 }
 0x6dd   :  { %v2691_v4 = vpop.eup %2690  ;;  %v1980_v33 = vpop.f32.mrf.mxu0  ;;  %vm2129_vm1 = vcmp.eq.s32.totalorder %v2128_v7, 1 }
 0x6de   :  { %v1902_v21 = vmul.f32 0.5, %v1901_v8  ;;  %v1906_v60 = vadd.f32 1.0, %v2691_v4  ;;  %v2020_v20 = vpop.f32.mrf.mxu1 }
 0x6df   :  { %v1981_v12 = vpop.f32.mrf.mxu0 }
 0x6e0   :  { %v1908_v22 = vmul.f32 %v1902_v21, %v1893_v19  ;;  %v1907_v13 = vmul.f32 0.5, %v1906_v60  ;;  %v2545_v49 = vpop.f32.mrf.mxu1 }
 0x6e2   :  { %v1909_v26 = vadd.f32 %v1908_v22, %v1811_v62  ;;  %v1911_v27 = vsub.f32 1.0, %v1907_v13  ;;  %v1913_v42 = vmul.f32 %v1907_v13, %v3754_v39 }
 0x6e4   :  { %2692 = vtanh.f32 %v1909_v26 }
 0x6f1   :  { %v2693_v41 = vpop.eup %2692 }
 0x6f2   :  { %v1912_v63 = vmul.f32 %v2693_v41, %v1911_v27 }
 0x6f4   :  { %v1914_v53 = vadd.f32 %v1913_v42, %v1912_v63 }
 0x6f6   :  { %v1923_v17 = vsel %vm1922_vm0, %v1914_v53, %v3754_v39 }
 0x6f7   :  { %v2023_v61 = vpack.c.bf16 %v1923_v17, %v1923_v17 }
 0x6f9   :  { %2057 = vmatmul.mubr.bf16.vlgmr.msra.gmra.mxu0 %v2023_v61  ;;  %2563 = vmatmul.mubr.bf16.vlgmr.msra.gmra.mxu1 %v2023_v61 }
 0x7b9   :  { %v2058_v38 = vpop.f32.mrf.mxu0  ;;  %v2099_v59 = vpop.f32.mrf.mxu1 }
 0x7ba   :  { %v2059_v58 = vadd.f32 %v2058_v38, %v3910_v47  ;;  %v2100_v47 = vadd.f32 %v2099_v59, %v3144_v24 }
 0x7bb   :  { %v2060_v28 = vpop.f32.mrf.mxu0  ;;  %v2564_v35 = vpop.f32.mrf.mxu1 }
 0x7bc   :  { %v2105_v39 = vadd.f32 %v2059_v58, %v1977_v40  ;;  %v2061_v23 = vadd.f32 %v2060_v28, %v3138_v31 }
 0x7bd   :  { %v2062_v36 = vpop.f32.mrf.mxu0  ;;  %v2102_v50 = vpop.f32.mrf.mxu1 }
 0x7be   :  { %v2106_v51 = vmul.f32 0.5, %v2105_v39  ;;  %v2110_v11 = vadd.f32 %v2061_v23, %v1979_v45 }
 0x7bf   :  { %v2063_v15 = vpop.f32.mrf.mxu0  ;;  %v2565_v25 = vpop.f32.mrf.mxu1 }
 0x7c0   :  { %2694 = vtanh.f32 %v2106_v51  ;;  %v2111_v1 = vmul.f32 0.5, %v2110_v11 }
 0x7c2   :  { %2696 = vtanh.f32 %v2111_v1 }
 0x7cd   :  { %v2695_v43 = vpop.eup %2694 }
 0x7ce   :  { %v2108_v44 = vadd.f32 1.0, %v2695_v43 }
 0x7cf   :  { %v2697_v6 = vpop.eup %2696 }
 0x7d0   :  { %v2109_v46 = vmul.f32 0.5, %v2108_v44  ;;  %v2113_v31 = vadd.f32 1.0, %v2697_v6 }
 0x7d2   :  { %v2115_v52 = vmul.f32 %v2109_v46, %v2100_v47  ;;  %v2114_v55 = vmul.f32 0.5, %v2113_v31 }
 0x7d4   :  { %v2116_v14 = vadd.f32 %v2115_v52, %v2018_v48  ;;  %v2118_v10 = vsub.f32 1.0, %v2114_v55  ;;  %v2120_v54 = vmul.f32 %v2114_v55, %v1923_v17 }
 0x7d6   :  { %2698 = vtanh.f32 %v2116_v14 }
 0x7e3   :  { %v2699_v9 = vpop.eup %2698 }
 0x7e4   :  { %v2119_v18 = vmul.f32 %v2699_v9, %v2118_v10 }
 0x7e6   :  { %v2121_v16 = vadd.f32 %v2120_v54, %v2119_v18 }
 0x7e8   :  { %v2130_v0 = vsel %vm2129_vm1, %v2121_v16, %v1923_v17 }
 0x7e9   :  { %2135 = vst [vmem:[#allocation9] sm:$0xff] %v2130_v0 }
 0x7ea   :  { %2140 = vsyncadd [#allocation5], 64  ;;  %s2827_s4 = smov [#allocation9]  }
 0x7eb   :  { %s2141_s5 = sshll.u32 %s2827_s4, 4  ;;  %s2142_s5 = int_to_ptr.vmem [resolvable:$true] %s2141_s5 }
 0x7ec   :  { %s2790_s19 = scalar_lea.vmem %s2142_s5, 64  ;;  %s2794_s20 = scalar_lea.vmem %s2142_s5, 128 }
 0x7ed   :  { %p2791_p1 = scmp.ne.s32.totalorder %s2142_s5, %s2790_s19  ;;  %p2795_p2 = scmp.lt.s32.totalorder %s2142_s5, %s2142_s5 }
 0x7ee   :  { %p2796_p3 = scmp.lt.s32.totalorder %s2794_s20, %s2790_s19 }
 0x7f0   :  { %p2797_p4 = por %p2796_p3, %p2795_p2 }
 0x7f2   :  { %p2798_p5 = pnand %p2797_p4, %p2791_p1 }
 0x7f4   :  { %2801 = shalt.err (!%p2798_p5)
}
 0x7f5   :  { %2147 = dma.vmem_to_hbm [thread:$0]  %s2142_s5, 64, %s3859_s6, [#allocation5], %s2820_s8, %s2820_s8, %s2821_s9  }
 0x7f6   :  { %2814 = dma.done.wait [#allocation5], 128  }
 0x7f7   :  { %2815 = vsyncadd [#allocation5], 4294967168 }
 0x7f8   :  { %2151 = vsyncpa [#allocation4], 1 }
 0x7f9   :  { %2152 = vsyncpa [#allocation7], 1 }
 0x7fa   :  { %2153 = vsyncpa [#allocation5], 1 }

</bundles_post_ra>
